<compile_context>
chip_gen: v5e
topology: v5e:2x2
jax: 0.10.0
libtpu: 0.0.40
codegen_flags: <defaults>
</compile_context>

<pallas_src>
import functools

import jax
import jax.numpy as jnp
import numpy as np
from jax.experimental import pallas as pl
from jax.experimental.pallas import tpu as pltpu


def _round_up(x, m):
    return ((x + m - 1) // m) * m


# ----------------------------------------------------------------------------
# Fused per-timestep kernel.  Grid = (T,), timestep axis is sequential
# ("arbitrary") because h / h_0 carry state in VMEM scratch.
#
#   t == 0 :  DMA dynamic_emb -> h_s, emb_rel -> h0_s; h_s <- normalize(h_s)
#   each t :  x_mean = A_t @ h                      (per-relation segment mean)
#             gi = gi_a_const + x_mean @ Wi_b       (emb_rel term hoisted)
#             gh = h_0 @ Wh + bh
#             r,z,n GRU gates -> h_0' ; h_0 <- normalize(h_0')
#             current_h = h        # TODO(synk): external DGL rgcn -> identity
#             h <- sigmoid(h @ Wt + bt) * normalize(current_h)
#                  + (1 - sigmoid(.)) * h           (time gate, residual = raw h)
#             hist[t] <- bf16(h) ;  h0_out <- h_0
#
# Lane padding note: all padded feature columns stay exactly 0 throughout:
# zero-padded weights/biases make the padded gate pre-activations 0, so
# z=0.5, n=tanh(0)=0 and the padded state columns remain 0*0.5 + 0.5*0 = 0;
# padded columns contribute 0 to every sum-of-squares, so the L2 norms are
# unchanged.  (Any non-zero padding would silently break this invariant.)
# ----------------------------------------------------------------------------
def _fused_step_kernel(a_ref, dyn_ref, rel_ref, gia_ref, wib_ref, wh_ref,
                       bh_ref, tgw_ref, tgb_ref,
                       hist_ref, h0_out_ref, h_s, h0_s, sem, *, dp):
    t = pl.program_id(0)

    @pl.when(t == 0)
    def _():
        # Bring initial states straight into the resident VMEM scratch; no
        # double-buffered constant blocks held for the whole grid.
        cp_h = pltpu.make_async_copy(dyn_ref, h_s, sem.at[0])
        cp_r = pltpu.make_async_copy(rel_ref, h0_s, sem.at[1])
        cp_h.start()
        cp_r.start()
        cp_h.wait()
        cp_r.wait()
        x = h_s[...]
        inv = jax.lax.rsqrt(
            jnp.maximum(jnp.sum(x * x, axis=1, keepdims=True), 1e-24))
        h_s[...] = x * inv                       # self.h = normalize(dynamic_emb)

    h = h_s[...]                                 # (E, DP)  f32, resident
    h0_prev = h0_s[...]                          # (2R, DP) f32, resident

    # per-relation segment mean: x_mean = A_t @ h  (bf16 operands, f32 accum)
    a = a_ref[0]                                 # (2R, E) bf16
    x_mean = jnp.dot(a, h.astype(jnp.bfloat16),
                     preferred_element_type=jnp.float32)        # (2R, DP)

    # GRUCell(2*h_dim, h_dim): gi = [emb_rel, x_mean] @ Wih.T + b_ih with the
    # emb_rel half hoisted into the constant gia_ref (computed once, f32).
    gi = gia_ref[...] + jnp.dot(x_mean.astype(jnp.bfloat16), wib_ref[...],
                                preferred_element_type=jnp.float32)
    gh = jnp.dot(h0_prev.astype(jnp.bfloat16), wh_ref[...],
                 preferred_element_type=jnp.float32) + bh_ref[...]
    r = jax.nn.sigmoid(gi[:, 0:dp] + gh[:, 0:dp])
    z = jax.nn.sigmoid(gi[:, dp:2 * dp] + gh[:, dp:2 * dp])
    n = jnp.tanh(gi[:, 2 * dp:3 * dp] + r * gh[:, 2 * dp:3 * dp])
    h0_new = (1.0 - z) * n + z * h0_prev
    inv0 = jax.lax.rsqrt(
        jnp.maximum(jnp.sum(h0_new * h0_new, axis=1, keepdims=True), 1e-24))
    h0_new = h0_new * inv0                        # F.normalize(h_0)
    h0_s[...] = h0_new
    h0_out_ref[...] = h0_new

    # TODO(synk): self.rgcn is an externally injected DGL graph encoder with no
    # clean Pallas equivalent -> identity (current_h = h), same as before.
    invc = jax.lax.rsqrt(
        jnp.maximum(jnp.sum(h * h, axis=1, keepdims=True), 1e-24))
    cur_n = h * invc                              # F.normalize(current_h)
    tw = jax.nn.sigmoid(
        jnp.dot(h.astype(jnp.bfloat16), tgw_ref[...],
                preferred_element_type=jnp.float32) + tgb_ref[...])
    h_new = tw * cur_n + (1.0 - tw) * h           # residual uses raw (pre-update) h
    h_s[...] = h_new
    hist_ref[0] = h_new.astype(jnp.bfloat16)      # halve HBM writeback


# ----------------------------------------------------------------------------
# Forward pass of RecurrentRGCN (layer_norm=True, sequence='regcn',
# use_static=False).  One pallas_call for the whole timestep sequence.
# ----------------------------------------------------------------------------
def recurrent_rgcn_forward(dynamic_emb, emb_rel, avg_mats, params):
    """avg_mats: list of (2*num_rels, num_ents) relation-averaging matrices,
    one per timestep (dense encoding of the g.r_to_e / g.r_len span means)."""
    w_ih, w_hh, b_ih, b_hh, tg_w, tg_b = params

    E, D = dynamic_emb.shape
    R2 = emb_rel.shape[0]
    T = len(avg_mats)
    DP = _round_up(D, 128)                        # pad feature axis to 128 lanes

    # --- one-time parameter preparation (hoisted out of the timestep loop) ---
    wia = jnp.transpose(w_ih[:, :D])              # (D, 3D)  acts on emb_rel
    wib = jnp.transpose(w_ih[:, D:2 * D])         # (D, 3D)  acts on x_mean
    wh = jnp.transpose(w_hh)                      # (D, 3D)

    def pad_gate_mat(w):                          # (D, 3D) -> (DP, 3*DP)
        blocks = [jnp.pad(w[:, g * D:(g + 1) * D], ((0, DP - D), (0, DP - D)))
                  for g in range(3)]
        return jnp.concatenate(blocks, axis=1)

    def pad_gate_rows(m):                         # (R2, 3D) -> (R2, 3*DP)
        blocks = [jnp.pad(m[:, g * D:(g + 1) * D], ((0, 0), (0, DP - D)))
                  for g in range(3)]
        return jnp.concatenate(blocks, axis=1)

    def pad_gate_vec(b):                          # (3D,) -> (1, 3*DP)
        blocks = [jnp.pad(b[g * D:(g + 1) * D], (0, DP - D)) for g in range(3)]
        return jnp.concatenate(blocks).reshape(1, 3 * DP)

    # Loop-invariant GRU input term, computed once in full f32 precision.
    gia_p = pad_gate_rows(emb_rel @ wia + b_ih)               # (R2, 3*DP) f32
    wib_p = pad_gate_mat(wib).astype(jnp.bfloat16)            # (DP, 3*DP)
    wh_p = pad_gate_mat(wh).astype(jnp.bfloat16)              # (DP, 3*DP)
    bh_p = pad_gate_vec(b_hh)                                 # (1, 3*DP) f32
    tgw_p = jnp.pad(tg_w, ((0, DP - D), (0, DP - D))).astype(jnp.bfloat16)
    tgb_p = jnp.pad(tg_b, (0, DP - D)).reshape(1, DP)         # (1, DP) f32
    dyn_p = jnp.pad(dynamic_emb, ((0, 0), (0, DP - D)))       # (E, DP) f32 (HBM)
    rel_p = jnp.pad(emb_rel, ((0, 0), (0, DP - D)))           # (R2, DP) f32 (HBM)

    # Stack the averaging matrices; bf16 operands, f32 accumulation on the MXU.
    a_stack = jnp.stack(avg_mats).astype(jnp.bfloat16)        # (T, 2R, E)

    kernel = functools.partial(_fused_step_kernel, dp=DP)

    flops = T * (2 * R2 * E * DP                 # segment-mean matmul
                 + 2 * (2 * R2 * DP * 3 * DP)    # gi_b + gh matmuls
                 + 2 * E * DP * DP)              # time gate matmul
    transcendentals = T * (3 * R2 * DP + E * DP + R2 + E)
    bytes_accessed = (a_stack.size * 2                         # A slabs (bf16)
                      + T * E * DP * 2 + R2 * DP * 4           # outputs
                      + (E * DP + R2 * DP + R2 * 3 * DP
                         + 3 * DP + DP) * 4                    # f32 inputs
                      + (2 * DP * 3 * DP + DP * DP) * 2)       # bf16 weights

    hist_p, h0_p = pl.pallas_call(
        kernel,
        grid=(T,),
        in_specs=[
            pl.BlockSpec((1, R2, E), lambda t: (t, 0, 0)),     # A_t, streamed
            pl.BlockSpec(memory_space=pl.ANY),                 # dynamic_emb (HBM)
            pl.BlockSpec(memory_space=pl.ANY),                 # emb_rel (HBM)
            pl.BlockSpec((R2, 3 * DP), lambda t: (0, 0)),      # gi_a (const, f32)
            pl.BlockSpec((DP, 3 * DP), lambda t: (0, 0)),      # Wi_b (bf16)
            pl.BlockSpec((DP, 3 * DP), lambda t: (0, 0)),      # Wh (bf16)
            pl.BlockSpec((1, 3 * DP), lambda t: (0, 0)),       # b_hh
            pl.BlockSpec((DP, DP), lambda t: (0, 0)),          # time_gate_weight
            pl.BlockSpec((1, DP), lambda t: (0, 0)),           # time_gate_bias
        ],
        out_specs=[
            pl.BlockSpec((1, E, DP), lambda t: (t, 0, 0)),     # history_embs[t]
            pl.BlockSpec((R2, DP), lambda t: (0, 0)),          # final h_0 (resident)
        ],
        out_shape=[
            jax.ShapeDtypeStruct((T, E, DP), jnp.bfloat16),
            jax.ShapeDtypeStruct((R2, DP), jnp.float32),
        ],
        scratch_shapes=[
            pltpu.VMEM((E, DP), jnp.float32),                  # entity state h
            pltpu.VMEM((R2, DP), jnp.float32),                 # relation state h_0
            pltpu.SemaphoreType.DMA((2,)),                     # t==0 init DMAs
        ],
        compiler_params=pltpu.CompilerParams(
            dimension_semantics=("arbitrary",),
            vmem_limit_bytes=64 * 1024 * 1024),
        cost_estimate=pl.CostEstimate(
            flops=flops, transcendentals=transcendentals,
            bytes_accessed=bytes_accessed),
    )(a_stack, dyn_p, rel_p, gia_p, wib_p, wh_p, bh_p, tgw_p, tgb_p)

    # Single padded->logical slice + cast (no per-timestep slice launches over
    # the padded f32 tensor); the per-t views below are over the small array.
    hist_full = hist_p[:, :, :D].astype(jnp.float32)           # (T, E, D)
    history_embs = [hist_full[t] for t in range(T)]
    h_0 = h0_p[:, :D]
    static_emb = None
    gate_list, degree_list = [], []
    return history_embs, static_emb, h_0, gate_list, degree_list


# ----------------------------------------------------------------------------
# Pure-JAX reference (mirrors the PyTorch forward with current_h = h identity)
# ----------------------------------------------------------------------------
def _reference_forward(dynamic_emb, emb_rel, avg_mats, params):
    w_ih, w_hh, b_ih, b_hh, tg_w, tg_b = params
    D = dynamic_emb.shape[1]

    def l2n(x):
        n = jnp.sqrt(jnp.sum(x * x, axis=1, keepdims=True))
        return x / jnp.maximum(n, 1e-12)

    h = l2n(dynamic_emb)
    h0 = None
    hist = []
    for i, A in enumerate(avg_mats):
        x_mean = A @ h
        x_in = jnp.concatenate([emb_rel, x_mean], axis=1)
        prev = emb_rel if i == 0 else h0
        gi = x_in @ w_ih.T + b_ih
        gh = prev @ w_hh.T + b_hh
        r = jax.nn.sigmoid(gi[:, :D] + gh[:, :D])
        z = jax.nn.sigmoid(gi[:, D:2 * D] + gh[:, D:2 * D])
        n = jnp.tanh(gi[:, 2 * D:] + r * gh[:, 2 * D:])
        h0 = l2n((1.0 - z) * n + z * prev)
        cur_n = l2n(h)
        tw = jax.nn.sigmoid(h @ tg_w + tg_b)
        h = tw * cur_n + (1.0 - tw) * h
        hist.append(h)
    return hist, h0


# ----------------------------------------------------------------------------
# Driver
# ----------------------------------------------------------------------------
if __name__ == "__main__":
    num_ents = 64
    num_rels = 8          # 2 * num_rels = 16 relation rows
    h_dim = 32
    sequence_len = 4

    key = jax.random.PRNGKey(0)
    ks = jax.random.split(key, 16)

    dynamic_emb = jax.random.normal(ks[0], (num_ents, h_dim), jnp.float32)
    emb_rel = 0.1 * jax.random.normal(ks[1], (2 * num_rels, h_dim), jnp.float32)

    # relation_cell_1 = nn.GRUCell(2*h_dim, h_dim)  (PyTorch uniform init)
    s = 1.0 / (h_dim ** 0.5)
    w_ih = jax.random.uniform(ks[2], (3 * h_dim, 2 * h_dim), jnp.float32, -s, s)
    w_hh = jax.random.uniform(ks[3], (3 * h_dim, h_dim), jnp.float32, -s, s)
    b_ih = jax.random.uniform(ks[4], (3 * h_dim,), jnp.float32, -s, s)
    b_hh = jax.random.uniform(ks[5], (3 * h_dim,), jnp.float32, -s, s)

    # time_gate_weight / bias (sequence == 'regcn'), xavier_uniform w/ relu gain
    gain = 2.0 ** 0.5
    lim = gain * (6.0 / (h_dim + h_dim)) ** 0.5
    tg_w = jax.random.uniform(ks[6], (h_dim, h_dim), jnp.float32, -lim, lim)
    tg_b = jnp.zeros((h_dim,), jnp.float32)

    # Synthetic graph sequence: one dense averaging matrix per timestep.
    # A[r, e] = 1/count_r if entity e lies in relation r's span, else 0;
    # relations with empty spans keep all-zero rows (== torch.zeros init).
    avg_mats = []
    for t in range(sequence_len):
        m = jax.random.bernoulli(ks[9 + t], 0.3,
                                 (2 * num_rels, num_ents)).astype(jnp.float32)
        cnt = jnp.sum(m, axis=1, keepdims=True)
        avg_mats.append(jnp.where(cnt > 0, m / jnp.maximum(cnt, 1.0), 0.0))

    params = (w_ih, w_hh, b_ih, b_hh, tg_w, tg_b)
    history_embs, static_emb, h_0, gate_list, degree_list = recurrent_rgcn_forward(
        dynamic_emb, emb_rel, avg_mats, params)

    jax.block_until_ready(history_embs[-1])
    jax.block_until_ready(h_0)

    assert len(history_embs) == sequence_len
    assert history_embs[-1].shape == (num_ents, h_dim)
    assert h_0.shape == (2 * num_rels, h_dim)

    # Correctness vs. pure-JAX reference (loose tol: bf16 matmuls + bf16 hist).
    ref_hist, ref_h0 = _reference_forward(dynamic_emb, emb_rel, avg_mats, params)
    np.testing.assert_allclose(np.asarray(history_embs[-1]),
                               np.asarray(ref_hist[-1]), rtol=2e-2, atol=2e-2)
    np.testing.assert_allclose(np.asarray(h_0), np.asarray(ref_h0),
                               rtol=2e-2, atol=2e-2)

    print("KERNEL_OK")
</pallas_src>

<mosaic_0001>
module attributes {stable_mosaic.version = 11 : i64} {
  func.func @_fused_step_kernel(%arg0: i32, %arg1: memref<1x16x64xbf16, #tpu.memory_space<vmem>>, %arg2: memref<64x128xf32, #tpu.memory_space<any>>, %arg3: memref<16x128xf32, #tpu.memory_space<any>>, %arg4: memref<16x384xf32, #tpu.memory_space<vmem>>, %arg5: memref<128x384xbf16, #tpu.memory_space<vmem>>, %arg6: memref<128x384xbf16, #tpu.memory_space<vmem>>, %arg7: memref<1x384xf32, #tpu.memory_space<vmem>>, %arg8: memref<128x128xbf16, #tpu.memory_space<vmem>>, %arg9: memref<1x128xf32, #tpu.memory_space<vmem>>, %arg10: memref<1x64x128xbf16, #tpu.memory_space<vmem>>, %arg11: memref<16x128xf32, #tpu.memory_space<vmem>>, %arg12: memref<64x128xf32, #tpu.memory_space<vmem>>, %arg13: memref<16x128xf32, #tpu.memory_space<vmem>>, %arg14: memref<2x!tpu.dma_semaphore, #tpu.memory_space<semaphore_mem>>) attributes {dimension_semantics = [#tpu.dimension_semantics<arbitrary>], iteration_bounds = array<i64: 4>, scalar_prefetch = 0 : i64, scratch_operands = 3 : i64, tpu.core_type = #tpu.core_type<tc>, window_params = [{transform_indices = @transform_0, window_bounds = array<i64: 1, 16, 64>}, {}, {}, {pipeline_mode = #tpu.pipeline_mode<synchronous>, transform_indices = @transform_3, window_bounds = array<i64: 16, 384>}, {pipeline_mode = #tpu.pipeline_mode<synchronous>, transform_indices = @transform_4, window_bounds = array<i64: 128, 384>}, {pipeline_mode = #tpu.pipeline_mode<synchronous>, transform_indices = @transform_5, window_bounds = array<i64: 128, 384>}, {pipeline_mode = #tpu.pipeline_mode<synchronous>, transform_indices = @transform_6, window_bounds = array<i64: 1, 384>}, {pipeline_mode = #tpu.pipeline_mode<synchronous>, transform_indices = @transform_7, window_bounds = array<i64: 128, 128>}, {pipeline_mode = #tpu.pipeline_mode<synchronous>, transform_indices = @transform_8, window_bounds = array<i64: 1, 128>}, {transform_indices = @transform_9, window_bounds = array<i64: 1, 64, 128>}, {pipeline_mode = #tpu.pipeline_mode<synchronous>, transform_indices = @transform_10, window_bounds = array<i64: 16, 128>}]} {
    %c0_i32 = arith.constant 0 : i32
    %0 = arith.cmpi eq, %arg0, %c0_i32 : i32
    %1 = arith.extui %0 : i1 to i32
    %c0_i32_0 = arith.constant 0 : i32
    %2 = arith.cmpi ne, %1, %c0_i32_0 : i32
    scf.if %2 {
      %c0_i32_40 = arith.constant 0 : i32
      %85 = tpu.memref_slice %arg14[%c0_i32_40] : memref<2x!tpu.dma_semaphore, #tpu.memory_space<semaphore_mem>> -> memref<1x!tpu.dma_semaphore, #tpu.memory_space<semaphore_mem>>
      %86 = tpu.memref_squeeze %85 : memref<1x!tpu.dma_semaphore, #tpu.memory_space<semaphore_mem>> -> memref<!tpu.dma_semaphore, #tpu.memory_space<semaphore_mem>>
      tpu.enqueue_dma source(%arg2 : memref<64x128xf32, #tpu.memory_space<any>>) target(%arg12 : memref<64x128xf32, #tpu.memory_space<vmem>>) target_semaphore(%86 : memref<!tpu.dma_semaphore, #tpu.memory_space<semaphore_mem>>)
      %c1_i32 = arith.constant 1 : i32
      %87 = tpu.memref_slice %arg14[%c1_i32] : memref<2x!tpu.dma_semaphore, #tpu.memory_space<semaphore_mem>> -> memref<1x!tpu.dma_semaphore, #tpu.memory_space<semaphore_mem>>
      %88 = tpu.memref_squeeze %87 : memref<1x!tpu.dma_semaphore, #tpu.memory_space<semaphore_mem>> -> memref<!tpu.dma_semaphore, #tpu.memory_space<semaphore_mem>>
      tpu.enqueue_dma source(%arg3 : memref<16x128xf32, #tpu.memory_space<any>>) target(%arg13 : memref<16x128xf32, #tpu.memory_space<vmem>>) target_semaphore(%88 : memref<!tpu.dma_semaphore, #tpu.memory_space<semaphore_mem>>)
      %c0_i32_41 = arith.constant 0 : i32
      %89 = tpu.memref_slice %arg14[%c0_i32_41] : memref<2x!tpu.dma_semaphore, #tpu.memory_space<semaphore_mem>> -> memref<1x!tpu.dma_semaphore, #tpu.memory_space<semaphore_mem>>
      %90 = tpu.memref_squeeze %89 : memref<1x!tpu.dma_semaphore, #tpu.memory_space<semaphore_mem>> -> memref<!tpu.dma_semaphore, #tpu.memory_space<semaphore_mem>>
      tpu.wait_dma2 semaphore(%90 : memref<!tpu.dma_semaphore, #tpu.memory_space<semaphore_mem>>) src(%arg2 : memref<64x128xf32, #tpu.memory_space<any>>) dst(%arg12 : memref<64x128xf32, #tpu.memory_space<vmem>>)
      %c1_i32_42 = arith.constant 1 : i32
      %91 = tpu.memref_slice %arg14[%c1_i32_42] : memref<2x!tpu.dma_semaphore, #tpu.memory_space<semaphore_mem>> -> memref<1x!tpu.dma_semaphore, #tpu.memory_space<semaphore_mem>>
      %92 = tpu.memref_squeeze %91 : memref<1x!tpu.dma_semaphore, #tpu.memory_space<semaphore_mem>> -> memref<!tpu.dma_semaphore, #tpu.memory_space<semaphore_mem>>
      tpu.wait_dma2 semaphore(%92 : memref<!tpu.dma_semaphore, #tpu.memory_space<semaphore_mem>>) src(%arg3 : memref<16x128xf32, #tpu.memory_space<any>>) dst(%arg13 : memref<16x128xf32, #tpu.memory_space<vmem>>)
      %c0_43 = arith.constant 0 : index
      %c0_44 = arith.constant 0 : index
      %93 = vector.load %arg12[%c0_43, %c0_44] : memref<64x128xf32, #tpu.memory_space<vmem>>, vector<64x128xf32>
      %94 = arith.mulf %93, %93 : vector<64x128xf32>
      %cst_45 = arith.constant dense<0.000000e+00> : vector<64xf32>
      %95 = vector.multi_reduction <add>, %94, %cst_45 [1] : vector<64x128xf32> to vector<64xf32>
      %96 = vector.shape_cast %95 : vector<64xf32> to vector<64x1xf32>
      %cst_46 = arith.constant 1.000000e-24 : f32
      %97 = vector.broadcast %cst_46 : f32 to vector<64x1xf32>
      %98 = arith.maximumf %96, %97 : vector<64x1xf32>
      %99 = math.rsqrt %98 : vector<64x1xf32>
      %100 = vector.broadcast %99 : vector<64x1xf32> to vector<64x128xf32>
      %101 = arith.mulf %93, %100 : vector<64x128xf32>
      %c0_47 = arith.constant 0 : index
      %c0_48 = arith.constant 0 : index
      %102 = vector.load %arg12[%c0_47, %c0_48] : memref<64x128xf32, #tpu.memory_space<vmem>>, vector<64x128xf32>
      tpu.vector_store %arg12[%c0_47, %c0_48], %101 {strides = array<i32>} : memref<64x128xf32, #tpu.memory_space<vmem>>, vector<64x128xf32>,
    } else {
    }
    %c0 = arith.constant 0 : index
    %c0_1 = arith.constant 0 : index
    %3 = vector.load %arg12[%c0, %c0_1] : memref<64x128xf32, #tpu.memory_space<vmem>>, vector<64x128xf32>
    %c0_2 = arith.constant 0 : index
    %c0_3 = arith.constant 0 : index
    %4 = vector.load %arg13[%c0_2, %c0_3] : memref<16x128xf32, #tpu.memory_space<vmem>>, vector<16x128xf32>
    %c0_4 = arith.constant 0 : index
    %c0_5 = arith.constant 0 : index
    %c0_6 = arith.constant 0 : index
    %5 = vector.load %arg1[%c0_4, %c0_5, %c0_6] : memref<1x16x64xbf16, #tpu.memory_space<vmem>>, vector<1x16x64xbf16>
    %6 = vector.shape_cast %5 : vector<1x16x64xbf16> to vector<16x64xbf16>
    %7 = arith.truncf %3 : vector<64x128xf32> to vector<64x128xbf16>
    %cst = arith.constant dense<0.000000e+00> : vector<16x128xf32>
    %8 = tpu.matmul %6, %7, %cst {dimension_numbers = #tpu.dot_dimension_numbers<[1], [0], [0], [1], [0, 0, 1, 1], [], []>} : vector<16x64xbf16>, vector<64x128xbf16>, vector<16x128xf32> -> vector<16x128xf32>
    %c0_7 = arith.constant 0 : index
    %c0_8 = arith.constant 0 : index
    %9 = vector.load %arg4[%c0_7, %c0_8] : memref<16x384xf32, #tpu.memory_space<vmem>>, vector<16x384xf32>
    %10 = arith.truncf %8 : vector<16x128xf32> to vector<16x128xbf16>
    %c0_9 = arith.constant 0 : index
    %c0_10 = arith.constant 0 : index
    %11 = vector.load %arg5[%c0_9, %c0_10] : memref<128x384xbf16, #tpu.memory_space<vmem>>, vector<128x384xbf16>
    %cst_11 = arith.constant dense<0.000000e+00> : vector<16x384xf32>
    %12 = tpu.matmul %10, %11, %cst_11 {dimension_numbers = #tpu.dot_dimension_numbers<[1], [0], [0], [1], [0, 0, 1, 1], [], []>} : vector<16x128xbf16>, vector<128x384xbf16>, vector<16x384xf32> -> vector<16x384xf32>
    %13 = arith.addf %9, %12 : vector<16x384xf32>
    %14 = arith.truncf %4 : vector<16x128xf32> to vector<16x128xbf16>
    %c0_12 = arith.constant 0 : index
    %c0_13 = arith.constant 0 : index
    %15 = vector.load %arg6[%c0_12, %c0_13] : memref<128x384xbf16, #tpu.memory_space<vmem>>, vector<128x384xbf16>
    %cst_14 = arith.constant dense<0.000000e+00> : vector<16x384xf32>
    %16 = tpu.matmul %14, %15, %cst_14 {dimension_numbers = #tpu.dot_dimension_numbers<[1], [0], [0], [1], [0, 0, 1, 1], [], []>} : vector<16x128xbf16>, vector<128x384xbf16>, vector<16x384xf32> -> vector<16x384xf32>
    %c0_15 = arith.constant 0 : index
    %c0_16 = arith.constant 0 : index
    %17 = vector.load %arg7[%c0_15, %c0_16] : memref<1x384xf32, #tpu.memory_space<vmem>>, vector<1x384xf32>
    %18 = vector.broadcast %17 : vector<1x384xf32> to vector<16x384xf32>
    %19 = arith.addf %16, %18 : vector<16x384xf32>
    %20 = vector.extract_strided_slice %13 {offsets = [0, 0], sizes = [16, 128], strides = [1, 1]} : vector<16x384xf32> to vector<16x128xf32>
    %21 = vector.extract_strided_slice %19 {offsets = [0, 0], sizes = [16, 128], strides = [1, 1]} : vector<16x384xf32> to vector<16x128xf32>
    %22 = arith.addf %20, %21 : vector<16x128xf32>
    %23 = arith.negf %22 : vector<16x128xf32>
    %24 = math.exp %23 : vector<16x128xf32>
    %cst_17 = arith.constant 1.000000e+00 : f32
    %25 = vector.broadcast %cst_17 : f32 to vector<16x128xf32>
    %26 = arith.addf %25, %24 : vector<16x128xf32>
    %27 = arith.divf %25, %26 : vector<16x128xf32>
    %28 = vector.extract_strided_slice %13 {offsets = [0, 128], sizes = [16, 128], strides = [1, 1]} : vector<16x384xf32> to vector<16x128xf32>
    %29 = vector.extract_strided_slice %19 {offsets = [0, 128], sizes = [16, 128], strides = [1, 1]} : vector<16x384xf32> to vector<16x128xf32>
    %30 = arith.addf %28, %29 : vector<16x128xf32>
    %31 = arith.negf %30 : vector<16x128xf32>
    %32 = math.exp %31 : vector<16x128xf32>
    %cst_18 = arith.constant 1.000000e+00 : f32
    %33 = vector.broadcast %cst_18 : f32 to vector<16x128xf32>
    %34 = arith.addf %33, %32 : vector<16x128xf32>
    %35 = arith.divf %33, %34 : vector<16x128xf32>
    %36 = vector.extract_strided_slice %13 {offsets = [0, 256], sizes = [16, 128], strides = [1, 1]} : vector<16x384xf32> to vector<16x128xf32>
    %37 = vector.extract_strided_slice %19 {offsets = [0, 256], sizes = [16, 128], strides = [1, 1]} : vector<16x384xf32> to vector<16x128xf32>
    %38 = arith.mulf %27, %37 : vector<16x128xf32>
    %39 = arith.addf %36, %38 : vector<16x128xf32>
    %40 = math.tanh %39 : vector<16x128xf32>
    %cst_19 = arith.constant 1.000000e+00 : f32
    %41 = vector.broadcast %cst_19 : f32 to vector<16x128xf32>
    %42 = arith.subf %41, %35 : vector<16x128xf32>
    %43 = arith.mulf %42, %40 : vector<16x128xf32>
    %44 = arith.mulf %35, %4 : vector<16x128xf32>
    %45 = arith.addf %43, %44 : vector<16x128xf32>
    %46 = arith.mulf %45, %45 : vector<16x128xf32>
    %cst_20 = arith.constant dense<0.000000e+00> : vector<16xf32>
    %47 = vector.multi_reduction <add>, %46, %cst_20 [1] : vector<16x128xf32> to vector<16xf32>
    %48 = vector.shape_cast %47 : vector<16xf32> to vector<16x1xf32>
    %cst_21 = arith.constant 1.000000e-24 : f32
    %49 = vector.broadcast %cst_21 : f32 to vector<16x1xf32>
    %50 = arith.maximumf %48, %49 : vector<16x1xf32>
    %51 = math.rsqrt %50 : vector<16x1xf32>
    %52 = vector.broadcast %51 : vector<16x1xf32> to vector<16x128xf32>
    %53 = arith.mulf %45, %52 : vector<16x128xf32>
    %c0_22 = arith.constant 0 : index
    %c0_23 = arith.constant 0 : index
    %54 = vector.load %arg13[%c0_22, %c0_23] : memref<16x128xf32, #tpu.memory_space<vmem>>, vector<16x128xf32>
    tpu.vector_store %arg13[%c0_22, %c0_23], %53 {strides = array<i32>} : memref<16x128xf32, #tpu.memory_space<vmem>>, vector<16x128xf32>,
    %c0_24 = arith.constant 0 : index
    %c0_25 = arith.constant 0 : index
    %55 = vector.load %arg11[%c0_24, %c0_25] : memref<16x128xf32, #tpu.memory_space<vmem>>, vector<16x128xf32>
    tpu.vector_store %arg11[%c0_24, %c0_25], %53 {strides = array<i32>} : memref<16x128xf32, #tpu.memory_space<vmem>>, vector<16x128xf32>,
    %56 = arith.mulf %3, %3 : vector<64x128xf32>
    %cst_26 = arith.constant dense<0.000000e+00> : vector<64xf32>
    %57 = vector.multi_reduction <add>, %56, %cst_26 [1] : vector<64x128xf32> to vector<64xf32>
    %58 = vector.shape_cast %57 : vector<64xf32> to vector<64x1xf32>
    %cst_27 = arith.constant 1.000000e-24 : f32
    %59 = vector.broadcast %cst_27 : f32 to vector<64x1xf32>
    %60 = arith.maximumf %58, %59 : vector<64x1xf32>
    %61 = math.rsqrt %60 : vector<64x1xf32>
    %62 = vector.broadcast %61 : vector<64x1xf32> to vector<64x128xf32>
    %63 = arith.mulf %3, %62 : vector<64x128xf32>
    %64 = arith.truncf %3 : vector<64x128xf32> to vector<64x128xbf16>
    %c0_28 = arith.constant 0 : index
    %c0_29 = arith.constant 0 : index
    %65 = vector.load %arg8[%c0_28, %c0_29] : memref<128x128xbf16, #tpu.memory_space<vmem>>, vector<128x128xbf16>
    %cst_30 = arith.constant dense<0.000000e+00> : vector<64x128xf32>
    %66 = tpu.matmul %64, %65, %cst_30 {dimension_numbers = #tpu.dot_dimension_numbers<[1], [0], [0], [1], [0, 0, 1, 1], [], []>} : vector<64x128xbf16>, vector<128x128xbf16>, vector<64x128xf32> -> vector<64x128xf32>
    %c0_31 = arith.constant 0 : index
    %c0_32 = arith.constant 0 : index
    %67 = vector.load %arg9[%c0_31, %c0_32] : memref<1x128xf32, #tpu.memory_space<vmem>>, vector<1x128xf32>
    %68 = vector.broadcast %67 : vector<1x128xf32> to vector<64x128xf32>
    %69 = arith.addf %66, %68 : vector<64x128xf32>
    %70 = arith.negf %69 : vector<64x128xf32>
    %71 = math.exp %70 : vector<64x128xf32>
    %cst_33 = arith.constant 1.000000e+00 : f32
    %72 = vector.broadcast %cst_33 : f32 to vector<64x128xf32>
    %73 = arith.addf %72, %71 : vector<64x128xf32>
    %74 = arith.divf %72, %73 : vector<64x128xf32>
    %75 = arith.mulf %74, %63 : vector<64x128xf32>
    %cst_34 = arith.constant 1.000000e+00 : f32
    %76 = vector.broadcast %cst_34 : f32 to vector<64x128xf32>
    %77 = arith.subf %76, %74 : vector<64x128xf32>
    %78 = arith.mulf %77, %3 : vector<64x128xf32>
    %79 = arith.addf %75, %78 : vector<64x128xf32>
    %c0_35 = arith.constant 0 : index
    %c0_36 = arith.constant 0 : index
    %80 = vector.load %arg12[%c0_35, %c0_36] : memref<64x128xf32, #tpu.memory_space<vmem>>, vector<64x128xf32>
    tpu.vector_store %arg12[%c0_35, %c0_36], %79 {strides = array<i32>} : memref<64x128xf32, #tpu.memory_space<vmem>>, vector<64x128xf32>,
    %81 = arith.truncf %79 : vector<64x128xf32> to vector<64x128xbf16>
    %c0_37 = arith.constant 0 : index
    %c0_38 = arith.constant 0 : index
    %c0_39 = arith.constant 0 : index
    %82 = vector.load %arg10[%c0_37, %c0_38, %c0_39] : memref<1x64x128xbf16, #tpu.memory_space<vmem>>, vector<1x64x128xbf16>
    %83 = vector.shape_cast %82 : vector<1x64x128xbf16> to vector<64x128xbf16>
    %84 = vector.shape_cast %81 : vector<64x128xbf16> to vector<1x64x128xbf16>
    tpu.vector_store %arg10[%c0_37, %c0_38, %c0_39], %84 {strides = array<i32>} : memref<1x64x128xbf16, #tpu.memory_space<vmem>>, vector<1x64x128xbf16>,
    return
  }
  func.func @transform_0(%arg0: i32) -> (i32, i32, i32) {
    %c0_i32 = arith.constant 0 : i32
    %c0_i32_0 = arith.constant 0 : i32
    %c0_i32_1 = arith.constant 0 : i32
    return %arg0, %c0_i32, %c0_i32_0 : i32, i32, i32
  }
  func.func @transform_3(%arg0: i32) -> (i32, i32) {
    %c0_i32 = arith.constant 0 : i32
    %c0_i32_0 = arith.constant 0 : i32
    %c0_i32_1 = arith.constant 0 : i32
    return %c0_i32, %c0_i32_0 : i32, i32
  }
  func.func @transform_4(%arg0: i32) -> (i32, i32) {
    %c0_i32 = arith.constant 0 : i32
    %c0_i32_0 = arith.constant 0 : i32
    %c0_i32_1 = arith.constant 0 : i32
    return %c0_i32, %c0_i32_0 : i32, i32
  }
  func.func @transform_5(%arg0: i32) -> (i32, i32) {
    %c0_i32 = arith.constant 0 : i32
    %c0_i32_0 = arith.constant 0 : i32
    %c0_i32_1 = arith.constant 0 : i32
    return %c0_i32, %c0_i32_0 : i32, i32
  }
  func.func @transform_6(%arg0: i32) -> (i32, i32) {
    %c0_i32 = arith.constant 0 : i32
    %c0_i32_0 = arith.constant 0 : i32
    %c0_i32_1 = arith.constant 0 : i32
    return %c0_i32, %c0_i32_0 : i32, i32
  }
  func.func @transform_7(%arg0: i32) -> (i32, i32) {
    %c0_i32 = arith.constant 0 : i32
    %c0_i32_0 = arith.constant 0 : i32
    %c0_i32_1 = arith.constant 0 : i32
    return %c0_i32, %c0_i32_0 : i32, i32
  }
  func.func @transform_8(%arg0: i32) -> (i32, i32) {
    %c0_i32 = arith.constant 0 : i32
    %c0_i32_0 = arith.constant 0 : i32
    %c0_i32_1 = arith.constant 0 : i32
    return %c0_i32, %c0_i32_0 : i32, i32
  }
  func.func @transform_9(%arg0: i32) -> (i32, i32, i32) {
    %c0_i32 = arith.constant 0 : i32
    %c0_i32_0 = arith.constant 0 : i32
    %c0_i32_1 = arith.constant 0 : i32
    return %arg0, %c0_i32, %c0_i32_0 : i32, i32, i32
  }
  func.func @transform_10(%arg0: i32) -> (i32, i32) {
    %c0_i32 = arith.constant 0 : i32
    %c0_i32_0 = arith.constant 0 : i32
    %c0_i32_1 = arith.constant 0 : i32
    return %c0_i32, %c0_i32_0 : i32, i32
  }
}

</mosaic_0001>

<bundles_post_ra>
// kernel: tpu_custom_call.1
= control target key start
LH: loop header
LB: loop body
LE: loop exit
PB: predicated region body
PF: predicated region fallthrough
CT: control target
= control target key end

     0   :  { %s3285_s0 = inlined_call_operand.hbm [shape: bf16[4,16,64], index: 0, kind: input, shape index: {}]   ;;  %s3286_s1 = inlined_call_operand.hbm [shape: f32[64,128], index: 1, kind: input, shape index: {}]   ;;  %s3287_s2 = inlined_call_operand.hbm [shape: f32[16,128], index: 2, kind: input, shape index: {}]   ;;  %s3288_s3 = inlined_call_operand.hbm [shape: f32[16,384], index: 3, kind: input, shape index: {}]   ;;  %s3289_s4 = inlined_call_operand.hbm [shape: bf16[128,384], index: 4, kind: input, shape index: {}]   ;;  %s3290_s5 = inlined_call_operand.hbm [shape: bf16[128,384], index: 5, kind: input, shape index: {}]   ;;  %s3291_s6 = inlined_call_operand.vmem [shape: f32[1,384], index: 6, kind: input, shape index: {}]   ;;  %s3292_s7 = inlined_call_operand.hbm [shape: bf16[128,128], index: 7, kind: input, shape index: {}]   ;;  %s3293_s8 = inlined_call_operand.vmem [shape: f32[1,128], index: 8, kind: input, shape index: {}]   ;;  %s3294_s9 = inlined_call_operand.hbm [shape: bf16[4,64,128], index: 9, kind: output, shape index: {0}]   ;;  %s3295_s10 = inlined_call_operand.hbm [shape: f32[16,128], index: 10, kind: output, shape index: {1}]  }
   0x1   :  { %3300 = sst [smem:[#allocation31_spill]] %s3288_s3 }
   0x2   :  { %3301 = sst [smem:[#allocation32_spill]] %s3289_s4 }
   0x3   :  { %3302 = sst [smem:[#allocation33_spill]] %s3290_s5 }
   0x4   :  { %16 = vsyncpa [#allocation6], 0 }
   0x5   :  { %18 = vsyncpa [#allocation6 + $0x1], 0 }
   0x6   :  { %19 = vsyncpa [#allocation9], 0 }
   0x7   :  { %20 = vsyncpa [#allocation12], 0 }
   0x8   :  { %21 = vsyncpa [#allocation7], 0 }
   0x9   :  { %23 = vsyncpa [#allocation7 + $0x1], 0 }
   0xa   :  { %24 = vsyncpa [#allocation16], 0  ;;  %s2684_s13 = smov 0   ;;  %s2686_s14 = smov 0  }
   0xb   :  { %s2688_s15 = smov 0   ;;  %s2690_s16 = smov 0  }
   0xc LB: > { %s2705_s17 = sadd.s32 4294967295, %s2610_s16   ;;  %s1751_s18 = sadd.s32 4294967294, %s2610_s16   ;;  %s2610_s16 = sphi %s2690_s16, %s3353_s16   ;;  %s2606_s15 = sphi %s2688_s15, %s3352_s15   ;;  %s2602_s14 = sphi %s2686_s14, %s3351_s14   ;;  %s2598_s13 = sphi %s2684_s13, %s3350_s13  }
   0xd   : > { %p50_p0 = scmp.ne.s32.totalorder %s2602_s14, %s2598_s13  ;;  %p51_p1 = scmp.eq.s32.totalorder %s2705_s17, 0 }
   0xe   : > { %p3299_p2 = scmp.eq.s32.totalorder %s2705_s17, 3  ;;  %p206_p3 = scmp.eq.s32.totalorder %s1751_s18, 3 }
   0xf   : > { %p2714_p4 = por %p51_p1, %p50_p0  ;;  %p1752_p5 = scmp.ge.s32.totalorder %s2610_s16, 1 }
  0x10   : > { %p2719_p6 = por %p206_p3, %p50_p0  ;;  %p234_p7 = scmp.lt.s32.totalorder %s2610_s16, 5 }
  0x11   : > { %s3306_s3 = sld [smem:[#allocation31_spill]]  ;;  %s2612_s25 = smov [#allocation8]  }
  0x12   : > { %s3304_s20 = scalar_select %p2719_p6, 1, 0 }
  0x13   : > { %p2728_p9 = pnand %p1752_p5, %p234_p7  ;;  %s247_s26 = sshll.u32 %s2612_s25, 4  ;;  %s248_s26 = int_to_ptr.vmem [resolvable:$true] %s247_s26 }
  0x14   : > { %3305 = sst [smem:[#allocation30_spill]] %s3304_s20  ;;  %s2613_s11 = smov 384  }
  0x15   : > { %p2125_p10 = pneg %p2728_p9  ;;  %s3309_s5 = sld [smem:[#allocation33_spill]] }
  0x16   : > { %s2614_s12 = smov 24   ;;  %s2615_s18 = smov [#allocation11]  }
  0x17   : > { %s245_s23 = sshll.u32 %s3306_s3, 4  ;;  %p2736_p11 = pnand %p2125_p10, %p51_p1  ;;  %s246_s23 = int_to_ptr.hbm [resolvable:$true] %s245_s23 }
  0x18   : > { %s275_s21 = sshll.u32 %s2615_s18, 4  ;;  %s3310_s4 = sld [smem:[#allocation32_spill]]  ;;  %s276_s21 = int_to_ptr.vmem [resolvable:$true] %s275_s21 }
  0x19   : > { %2128 = dma.hbm_to_vmem [thread:$0]  (!%p2736_p11), %s246_s23, 768, %s248_s26, [#allocation9], %s2613_s11, %s2613_s11, %s2614_s12  }
  0x1a   : > { %s2616_s28 = smov 192   ;;  %s2617_s29 = smov 12  }
  0x1b   : > { %s273_s30 = sshll.u32 %s3309_s5, 4  ;;  %s290_s23 = sshll.u32 %s3292_s7, 4  ;;  %s274_s30 = int_to_ptr.hbm [resolvable:$true] %s273_s30  ;;  %s291_s23 = int_to_ptr.hbm [resolvable:$true] %s290_s23 }
  0x1c   : > { %2134 = dma.hbm_to_vmem [thread:$0]  (!%p2736_p11), %s274_s30, 3072, %s276_s21, [#allocation12], %s2616_s28, %s2616_s28, %s2617_s29  }
  0x1d   : > { %s2618_s26 = smov [#allocation10]   ;;  %s2619_s12 = smov [#allocation13]  }
  0x1e   : > { %s259_s3 = sshll.u32 %s3310_s4, 4  ;;  %s261_s11 = sshll.u32 %s2618_s26, 4  ;;  %s260_s3 = int_to_ptr.hbm [resolvable:$true] %s259_s3  ;;  %s262_s11 = int_to_ptr.vmem [resolvable:$true] %s261_s11 }
  0x1f   : > { %2131 = dma.hbm_to_vmem [thread:$0]  (!%p2736_p11), %s260_s3, 3072, %s262_s11, [#allocation9], %s2616_s28, %s2616_s28, %s2617_s29  }
  0x20   : > { %s292_s30 = sshll.u32 %s2619_s12, 4  ;;  %s3297_s5 = smov 64   ;;  %s293_s30 = int_to_ptr.vmem [resolvable:$true] %s292_s30 }
  0x21   : > { %s3298_s20 = smov 4   ;;  %s2761_s18 = sadd.s32 1, %s2610_s16  }
  0x22   : > { %2137 = dma.hbm_to_vmem [thread:$0]  (!%p2736_p11), %s291_s23, 1024, %s293_s30, [#allocation12], %s3297_s5, %s3297_s5, %s3298_s20  }
  0x23   : > { %s34_s21 = ssub.s32 %s2610_s16, %s2761_s18  ;;  %s37_s22 = sadd.s32 1, %s2606_s15 }
  0x24   : > { %p35_p12 = scmp.eq.s32.totalorder %s34_s21, 0  ;;  %p44_p13 = scmp.ne.s32.totalorder %s2606_s15, %s2602_s14 }
  0x25   : > { %p45_p0 = scmp.eq.s32.totalorder %s2610_s16, 0  ;;  %p2150_p7 = scmp.lt.s32.totalorder %s2610_s16, 4 }
  0x26   : > { %s2770_s3 = scalar_select %p35_p12, %s2606_s15, %s37_s22  }
  0x27   : > { %p46_p3 = por %p45_p0, %p44_p13  ;;  %p2774_p5 = por %p3299_p2, %p44_p13 }
  0x28   : > { %s309_s27 = sand.u32 1, %s2606_s15   ;;  %s2019_s29 = sshll.u32 %s2610_s16, 3 }
  0x29   : > { %s1758_s28 = sshll.u32 %s309_s27, 3  ;;  %s318_s11 = scalar_lea.hbm %s3285_s0, %s2019_s29 }
  0x2a   : > { %s313_s12 = scalar_lea.vmem [#allocation5], %s1758_s28  ;;  %s319_s21 = sshll.u32 %s318_s11, 4  ;;  %s320_s21 = int_to_ptr.hbm [resolvable:$true] %s319_s21 }
  0x2b   : > { %s321_s30 = sshll.u32 %s313_s12, 4  ;;  %p2784_p10 = pnand %p2150_p7, %p46_p3  ;;  %s322_s30 = int_to_ptr.vmem [resolvable:$true] %s321_s30 }
  0x2c   : > { %s310_s5 = scalar_lea.sflag [#allocation6], %s309_s27  ;;  %s2422_s20 = sshra.s32 %s320_s21, 4  ;;  %s2423_s20 = int_to_ptr.hbm [resolvable:$true] %s2422_s20 }
  0x2d   : > { %s2424_s4 = scalar_lea.hbm %s2423_s20, 8  ;;  %p2426_p12 = pneg %p2784_p10 }
  0x2e   : > { %p2425_p11 = scmp.ne.s32.totalorder %s2423_s20, %s2424_s4  ;;  %s2429_s23 = scalar_lea.hbm %s3285_s0, 32 }
  0x2f   : > { %p2430_p3 = scmp.lt.s32.totalorder %s2423_s20, %s3285_s0  ;;  %p2431_p7 = scmp.lt.s32.totalorder %s2429_s23, %s2424_s4 }
  0x30   : > { %p2427_p13 = pnand %p2426_p12, %p2425_p11 }
  0x31   : > { %p2432_p2 = por %p2431_p7, %p2430_p3 }
  0x32   : > { %p2428_p0 = pneg %p2427_p13 }
  0x34   : > { %p2433_p8 = pnand %p2432_p2, %p2428_p0 }
  0x36   : > { %2436 = shalt.err (!%p2433_p8)
}
  0x37   : > { %s3313_s27 = smov 4   ;;  %s3314_s12 = smov 64  }
  0x38   : > { %2141 = dma.hbm_to_vmem [thread:$0]  (!%p2784_p10), %s320_s21, 128, %s322_s30, %s310_s5, %s3314_s12, %s3314_s12, %s3313_s27  }
  0x39   : > { %333 = sbr.rel (%p2728_p9) target bundleno = 746 (0x2ea), region = 48  ;;  %s2804_s29 = sand.u32 (!%p2728_p9), 1, %s2602_s14  }
  0x3a   : > { %s1762_s20 = sshll.u32 (!%p2728_p9), %s2804_s29, 3  ;;  %s336_s4 = scalar_lea.sflag (!%p2728_p9), [#allocation6], %s2804_s29 }
  0x3b   : > { %s2808_s28 = scalar_lea.vmem (!%p2728_p9), [#allocation5], %s1762_s20 }
  0x3e   : > { %2573 = dma.done.wait (%p2714_p4), %s336_s4, 128  }
  0x3f   : > { %2575 = vsyncadd (%p2714_p4), %s336_s4, 4294967168 }
  0x40   : > { %2577 = dma.done.wait (%p51_p1), [#allocation9], 3840  }
  0x41   : > { %2579 = vsyncadd (%p51_p1), [#allocation9], 4294963456 }
  0x42   : > { %2581 = dma.done.wait (%p51_p1), [#allocation12], 4096  }
  0x43   : > { %2583 = vsyncadd (%p51_p1), [#allocation12], 4294963200  ;;  %s1767_s24 = sshll.u32 %s2804_s29, 5  ;;  %p3315_p2 = scmp.ne.s32.totalorder %s2705_s17, 0 }
  0x44   : > { %s2823_s5 = scalar_lea.vmem [#allocation14], %s1767_s24  ;;  %s405_s21 = sshll.u32 (!%p3315_p2), %s3286_s1, 4  ;;  %s406_s21 = int_to_ptr.hbm [resolvable:$true] %s405_s21 }
  0x45   : > { %397 = sbr.rel (%p3315_p2) target bundleno = 240 (0xf0), region = 72  ;;  %s2622_s22 = smov (!%p3315_p2), [#allocation2]  }
  0x46   : > { %s407_s23 = sshll.u32 (!%p3315_p2), %s2622_s22, 4  ;;  %s419_s27 = sshll.u32 (!%p3315_p2), %s3287_s2, 4  ;;  %s408_s23 = int_to_ptr.vmem [resolvable:$true] %s407_s23  ;;  %s420_s27 = int_to_ptr.hbm [resolvable:$true] %s419_s27 }
  0x47   : > { %410 = dma.hbm_to_vmem [thread:$0]  (!%p3315_p2), %s406_s21, 1024, %s408_s23, [#allocation4] }
  0x48   : > { %s2623_s12 = smov (!%p3315_p2), [#allocation3]  }
  0x49   : > { %s421_s20 = sshll.u32 (!%p3315_p2), %s2623_s12, 4  ;;  %s422_s20 = int_to_ptr.vmem [resolvable:$true] %s421_s20 }
  0x4a   : > { %424 = dma.hbm_to_vmem [thread:$0]  %s420_s27, 256, %s422_s20, [#allocation4 + $0x1] }
  0x4b   : > { %2584 = dma.done.wait [#allocation4], 1024 }
  0x4c   : > { %2585 = vsyncadd [#allocation4], 4294966272 }
  0x4d   : > { %2586 = dma.done.wait [#allocation4 + $0x1], 256 }
  0x4e   : > { %2587 = vsyncadd [#allocation4 + $0x1], 4294967040  ;;  %v2833_v0 = vld [vmem:[#allocation2 + $0x20] sm:$0xff]  ;;  %v2835_v1 = vld [vmem:[#allocation2 + $0x10] sm:$0xff] }
  0x4f   : > { %v2837_v2 = vld [vmem:[#allocation2] sm:$0xff]  ;;  %v443_v3 = vmul.f32 %v2833_v0, %v2833_v0  ;;  %v441_v4 = vmul.f32 %v2835_v1, %v2835_v1  ;;  %v2845_v6 = vld [vmem:[#allocation2 + $0x28] sm:$0xff]  ;;  %v2847_v7 = vld [vmem:[#allocation2 + $0x18] sm:$0xff] }
  0x50   : > { %v439_v5 = vmul.f32 %v2837_v2, %v2837_v2  ;;  %v2849_v8 = vld [vmem:[#allocation2 + $0x8] sm:$0xff]  ;;  %v444_v9 = vmul.f32 %v2845_v6, %v2845_v6  ;;  %v442_v10 = vmul.f32 %v2847_v7, %v2847_v7  ;;  %v2857_v12 = vld [vmem:[#allocation2 + $0x38] sm:$0xff]  ;;  %v2859_v13 = vld [vmem:[#allocation2 + $0x30] sm:$0xff] }
  0x51   : > { %455 = vadd.xlane.f32.xlu2 %v443_v3  ;;  %451 = vadd.xlane.f32.xlu1 %v441_v4  ;;  %v440_v11 = vmul.f32 %v2849_v8, %v2849_v8  ;;  %v446_v14 = vmul.f32 %v2857_v12, %v2857_v12  ;;  %v445_v15 = vmul.f32 %v2859_v13, %v2859_v13 }
  0x52   : > { %447 = vadd.xlane.f32.xlu0 %v439_v5 }
  0x59   : > { %457 = vadd.xlane.f32.xlu2 %v444_v9  ;;  %453 = vadd.xlane.f32.xlu1 %v442_v10 }
  0x5a   : > { %449 = vadd.xlane.f32.xlu0 %v440_v11 }
  0x61   : > { %461 = vadd.xlane.f32.xlu1 %v446_v14 }
  0x62   : > { %459 = vadd.xlane.f32.xlu0 %v445_v15 }
  0xc4   : > { %v456_v16 = vpop.xlane.xlu2 %455  ;;  %v452_v17 = vpop.xlane.xlu1 %451 }
  0xc5   : > { %v467_v18 = vmax.f32 %v456_v16, 1e-24  ;;  %v465_v19 = vmax.f32 %v452_v17, 1e-24  ;;  %v448_v20 = vpop.xlane.xlu0 %447 }
  0xc6   : > { %v463_v21 = vmax.f32 %v448_v20, 1e-24 }
  0xc7   : > { %2207 = vrsqrt.f32 %v467_v18  ;;  %vm517_vm0 = vweird.f32 %v467_v18  ;;  %vm497_vm2 = vweird.f32 %v465_v19 }
  0xc8   : > { %2209 = vrsqrt.f32 %v465_v19  ;;  %vm477_vm6 = vweird.f32 %v463_v21 }
  0xc9   : > { %2211 = vrsqrt.f32 %v463_v21 }
  0xcc   : > { %v458_v22 = vpop.xlane.xlu2 %457  ;;  %v454_v23 = vpop.xlane.xlu1 %453 }
  0xcd   : > { %v2208_v24 = vpop.eup %2207  ;;  %v2865_v25 = vmax.f32 %v458_v22, 1e-24  ;;  %v2867_v26 = vmax.f32 %v454_v23, 1e-24  ;;  %v450_v27 = vpop.xlane.xlu0 %449 }
  0xce   : > { %v2210_v28 = vpop.eup %2209  ;;  %v512_v29 = vmul.f32 %v2208_v24, %v467_v18  ;;  %v2869_v30 = vmax.f32 %v450_v27, 1e-24  ;;  %vm518_vm1 = vweird.f32 %v2208_v24 }
  0xcf   : > { %v2212_v31 = vpop.eup %2211  ;;  %v492_v32 = vmul.f32 %v2210_v28, %v465_v19  ;;  %2213 = vrsqrt.f32 %v2865_v25  ;;  %vm498_vm3 = vweird.f32 %v2210_v28  ;;  %vm519_vm5 = vmor %vm517_vm0, %vm518_vm1  ;;  %vm527_vm9 = vweird.f32 %v2865_v25 }
  0xd0   : > { %v513_v33 = vmul.f32 %v2208_v24, %v512_v29  ;;  %v472_v34 = vmul.f32 %v2212_v31, %v463_v21  ;;  %2215 = vrsqrt.f32 %v2867_v26  ;;  %vm478_vm4 = vweird.f32 %v2212_v31  ;;  %vm499_vm7 = vmor %vm497_vm2, %vm498_vm3 }
  0xd1   : > { %v493_v35 = vmul.f32 %v2210_v28, %v492_v32  ;;  %2217 = vrsqrt.f32 %v2869_v30  ;;  %vm479_vm8 = vmor %vm477_vm6, %vm478_vm4  ;;  %vm507_vm14 = vweird.f32 %v2867_v26  ;;  %vm487_vm0 = vweird.f32 %v2869_v30 }
  0xd2   : > { %v514_v36 = vmul.f32 0.5, %v513_v33  ;;  %v473_v37 = vmul.f32 %v2212_v31, %v472_v34 }
  0xd3   : > { %v494_v38 = vmul.f32 0.5, %v493_v35 }
  0xd4   : > { %v515_v39 = vsub.f32 1.5, %v514_v36  ;;  %v474_v40 = vmul.f32 0.5, %v473_v37  ;;  %v462_v41 = vpop.xlane.xlu1 %461 }
  0xd5   : > { %v2214_v42 = vpop.eup %2213  ;;  %v495_v43 = vsub.f32 1.5, %v494_v38  ;;  %v2874_v44 = vmax.f32 %v462_v41, 1e-24  ;;  %v460_v56 = vpop.xlane.xlu0 %459 }
  0xd6   : > { %v2216_v45 = vpop.eup %2215  ;;  %v516_v46 = vmul.f32 %v2208_v24, %v515_v39  ;;  %v475_v47 = vsub.f32 1.5, %v474_v40  ;;  %v522_v48 = vmul.f32 %v2214_v42, %v2865_v25  ;;  %v469_v5 = vmax.f32 %v460_v56, 1e-24 }
  0xd7   : > { %v2218_v49 = vpop.eup %2217  ;;  %v496_v50 = vmul.f32 %v2210_v28, %v495_v43  ;;  %v502_v51 = vmul.f32 %v2216_v45, %v2867_v26  ;;  %2219 = vrsqrt.f32 %v2874_v44  ;;  %vm528_vm10 = vweird.f32 %v2214_v42 }
  0xd8   : > { %v520_v52 = vsel %vm519_vm5, %v2208_v24, %v516_v46  ;;  %v476_v53 = vmul.f32 %v2212_v31, %v475_v47  ;;  %v523_v54 = vmul.f32 %v2214_v42, %v522_v48  ;;  %v482_v55 = vmul.f32 %v2218_v49, %v2869_v30  ;;  %vm529_vm13 = vmor %vm527_vm9, %vm528_vm10 }
  0xd9   : > { %v555_v57 = vmul.f32 %v520_v52, %v2833_v0  ;;  %v500_v58 = vsel %vm499_vm7, %v2210_v28, %v496_v50  ;;  %v503_v59 = vmul.f32 %v2216_v45, %v502_v51  ;;  %vm508_vm11 = vweird.f32 %v2216_v45 }
  0xda   : > { %v553_v60 = vmul.f32 %v500_v58, %v2835_v1  ;;  %v480_v61 = vsel %vm479_vm8, %v2212_v31, %v476_v53  ;;  %v524_v62 = vmul.f32 0.5, %v523_v54  ;;  %v483_v63 = vmul.f32 %v2218_v49, %v482_v55  ;;  %vm509_vm15 = vmor %vm507_vm14, %vm508_vm11 }
  0xdb   : > { %563 = vst [vmem:[#allocation2 + $0x20] sm:$0xff] %v555_v57  ;;  %v551_v3 = vmul.f32 %v480_v61, %v2837_v2  ;;  %v504_v4 = vmul.f32 0.5, %v503_v59  ;;  %2221 = vrsqrt.f32 %v469_v5  ;;  %vm488_vm12 = vweird.f32 %v2218_v49 }
  0xdc   : > { %561 = vst [vmem:[#allocation2 + $0x10] sm:$0xff] %v553_v60  ;;  %v525_v9 = vsub.f32 1.5, %v524_v62  ;;  %v484_v0 = vmul.f32 0.5, %v483_v63  ;;  %vm489_vm1 = vmor %vm487_vm0, %vm488_vm12  ;;  %vm547_vm3 = vweird.f32 %v2874_v44  ;;  %vm537_vm6 = vweird.f32 %v469_v5 }
  0xdd   : > { %v2220_v10 = vpop.eup %2219  ;;  %559 = vst [vmem:[#allocation2] sm:$0xff] %v551_v3  ;;  %v505_v11 = vsub.f32 1.5, %v504_v4 }
  0xde   : > { %v526_v1 = vmul.f32 %v2214_v42, %v525_v9  ;;  %v485_v14 = vsub.f32 1.5, %v484_v0  ;;  %v542_v15 = vmul.f32 %v2220_v10, %v2874_v44  ;;  %vm548_vm2 = vweird.f32 %v2220_v10 }
  0xdf   : > { %v506_v2 = vmul.f32 %v2216_v45, %v505_v11  ;;  %vm549_vm4 = vmor %vm547_vm3, %vm548_vm2 }
  0xe0   : > { %v530_v16 = vsel %vm529_vm13, %v2214_v42, %v526_v1  ;;  %v486_v17 = vmul.f32 %v2218_v49, %v485_v14  ;;  %v543_v18 = vmul.f32 %v2220_v10, %v542_v15 }
  0xe1   : > { %v556_v19 = vmul.f32 %v530_v16, %v2845_v6  ;;  %v510_v20 = vsel %vm509_vm15, %v2216_v45, %v506_v2  ;;  %v2222_v24 = vpop.eup %2221 }
  0xe2   : > { %v554_v21 = vmul.f32 %v510_v20, %v2847_v7  ;;  %v490_v22 = vsel %vm489_vm1, %v2218_v49, %v486_v17  ;;  %v544_v23 = vmul.f32 0.5, %v543_v18  ;;  %v532_v27 = vmul.f32 %v2222_v24, %v469_v5 }
  0xe3   : > { %564 = vst [vmem:[#allocation2 + $0x28] sm:$0xff] %v556_v19  ;;  %v552_v25 = vmul.f32 %v490_v22, %v2849_v8  ;;  %vm538_vm5 = vweird.f32 %v2222_v24 }
  0xe4   : > { %562 = vst [vmem:[#allocation2 + $0x18] sm:$0xff] %v554_v21  ;;  %v545_v26 = vsub.f32 1.5, %v544_v23  ;;  %v533_v29 = vmul.f32 %v2222_v24, %v532_v27  ;;  %vm539_vm7 = vmor %vm537_vm6, %vm538_vm5 }
  0xe5   : > { %560 = vst [vmem:[#allocation2 + $0x8] sm:$0xff] %v552_v25 }
  0xe6   : > { %v546_v28 = vmul.f32 %v2220_v10, %v545_v26  ;;  %v534_v30 = vmul.f32 0.5, %v533_v29 }
  0xe8   : > { %v550_v6 = vsel %vm549_vm4, %v2220_v10, %v546_v28  ;;  %v535_v31 = vsub.f32 1.5, %v534_v30 }
  0xe9   : > { %v558_v7 = vmul.f32 %v550_v6, %v2857_v12 }
  0xea   : > { %v536_v32 = vmul.f32 %v2222_v24, %v535_v31 }
  0xeb   : > { %566 = vst [vmem:[#allocation2 + $0x38] sm:$0xff] %v558_v7 }
  0xec   : > { %v540_v8 = vsel %vm539_vm7, %v2222_v24, %v536_v32 }
  0xed   : > { %v557_v33 = vmul.f32 %v540_v8, %v2859_v13 }
  0xef   : > { %565 = vst [vmem:[#allocation2 + $0x30] sm:$0xff] %v557_v33 }
  0xf0 PF: > { %v2900_v36 = vld [vmem:[#allocation2 + $0x20] sm:$0xff]  ;;  %v2906_v37 = vld [vmem:[#allocation2 + $0x28] sm:$0xff]  ;;  %v2913_v13 = vld [vmem:[#allocation2 + $0x10] sm:$0xff]  ;;  %vm588_vm8 = vcmask 523264   ;;  %s2077_s30 = sshll.u32 %s2705_s17, 5  ;;  %s1598_s26 = sshll.u32 %s2823_s5, 4  ;;  %s1599_s26 = int_to_ptr.vmem [resolvable:$true] %s1598_s26 }
  0xf1   : > { %v2911_v38 = vpack.c.bf16 %v2906_v37, %v2900_v36  ;;  %v1860_v39 = vld [vmem:[#allocation10 + $0xa8] sm:$0xf]  ;;  %v2043_v40 = vld [vmem:[#allocation10 + $0xb0] sm:$0xf0]  ;;  %v1848_v43 = vld [vmem:[#allocation10 + $0x90] sm:$0xf]  ;;  %s1597_s23 = scalar_lea.hbm %s3294_s9, %s2077_s30 }
  0xf2   : > { %v2898_v35 = vld [vmem:[#allocation2 + $0x38] sm:$0xff]  ;;  %v1861_v42 = vor.u32 %v2043_v40, %v1860_v39  ;;  %v2040_v44 = vld [vmem:[#allocation10 + $0x98] sm:$0xf0]  ;;  %v2922_v47 = vld [vmem:[#allocation2] sm:$0xff]  ;;  %s1600_s11 = sshll.u32 %s1597_s23, 4  ;;  %s1586_s27 = scalar_lea.sflag [#allocation7], %s2804_s29  ;;  %s1601_s11 = int_to_ptr.hbm [resolvable:$true] %s1600_s11 }
  0xf3   : > { %v2915_v41 = vld [vmem:[#allocation2 + $0x18] sm:$0xff]  ;;  %v1849_v45 = vor.u32 %v2040_v44, %v1848_v43  ;;  %v1836_v48 = vld [vmem:[#allocation10 + $0x78] sm:$0xf]  ;;  %v2037_v49 = vld [vmem:[#allocation10 + $0x80] sm:$0xf0]  ;;  %s2514_s12 = sshra.s32 %s1601_s11, 4  ;;  %s2515_s12 = int_to_ptr.hbm [resolvable:$true] %s2514_s12 }
  0xf4   : > { %773 = vmatpush.bf16.msra.mxu1 %v1861_v42  ;;  %v2920_v46 = vpack.c.bf16 %v2915_v41, %v2913_v13  ;;  %v2924_v50 = vld [vmem:[#allocation2 + $0x8] sm:$0xff]  ;;  %v2042_v51 = vld [vmem:[#allocation10 + $0xac] sm:$0xf]  ;;  %v1868_v53 = vld [vmem:[#allocation10 + $0xb0] sm:$0xf]  ;;  %v1837_v56 = vor.u32 %v2037_v49, %v1836_v48  ;;  %s2516_s20 = scalar_lea.hbm %s2515_s12, 32  ;;  %p2521_p9 = scmp.lt.s32.totalorder %s2515_s12, %s3294_s9 }
  0xf5   : > { %v1862_v52 = vld [vmem:[#allocation10 + $0xb4] sm:$0xf0]  ;;  %v2044_v54 = vld [vmem:[#allocation10 + $0xb8] sm:$0xf0]  ;;  %v2039_v57 = vld [vmem:[#allocation10 + $0x94] sm:$0xf]  ;;  %v2929_v59 = vpack.c.bf16 %v2924_v50, %v2922_v47  ;;  %p2517_p1 = scmp.ne.s32.totalorder %s2515_s12, %s2516_s20 }
  0xf6   : > { %v2896_v34 = vld [vmem:[#allocation2 + $0x30] sm:$0xff]  ;;  %v1865_v55 = vor.u32 %v2042_v51, %v1862_v52  ;;  %v2034_v61 = vld [vmem:[#allocation10 + $0x68] sm:$0xf0]  ;;  %v1869_v63 = vor.u32 %v2044_v54, %v1868_v53  ;;  %v2036_v3 = vld [vmem:[#allocation10 + $0x7c] sm:$0xf]  ;;  %s2520_s24 = scalar_lea.hbm %s3294_s9, 128 }
  0xf7   : > { %v2904_v12 = vpack.c.bf16 %v2898_v35, %v2896_v34  ;;  %v1850_v58 = vld [vmem:[#allocation10 + $0x9c] sm:$0xf0]  ;;  %v1838_v4 = vld [vmem:[#allocation10 + $0x84] sm:$0xf0]  ;;  %v1856_v5 = vld [vmem:[#allocation10 + $0x98] sm:$0xf]  ;;  %p2518_p4 = pnand %p2517_p1, %p2774_p5  ;;  %p2522_p10 = scmp.lt.s32.totalorder %s2520_s24, %s2516_s20 }
  0xf8   : > { %774 = vmatpush.bf16.msra.mxu1 %v1849_v45  ;;  %v1824_v60 = vld [vmem:[#allocation10 + $0x60] sm:$0xf]  ;;  %787 = vmatpush.bf16.msra.mxu2 %v1865_v55  ;;  %v1853_v62 = vor.u32 %v2039_v57, %v1850_v58  ;;  %v2041_v9 = vld [vmem:[#allocation10 + $0xa0] sm:$0xf0]  ;;  %v1812_v11 = vld [vmem:[#allocation10 + $0x48] sm:$0xf]  ;;  %v1841_v14 = vor.u32 %v2036_v3, %v1838_v4 }
  0xf9   : > { %596 = vmatpush.bf16.msra.mxu0 %v2904_v12  ;;  %v2020_v0 = vld [vmem:[%s2808_s28] sm:$0xff]  ;;  %v1825_v10 = vor.u32 %v2034_v61, %v1824_v60  ;;  %v2031_v1 = vld [vmem:[#allocation10 + $0x50] sm:$0xf0]  ;;  %v1857_v15 = vor.u32 %v2041_v9, %v1856_v5  ;;  %v1826_v16 = vld [vmem:[#allocation10 + $0x6c] sm:$0xf0]  ;;  %p2519_p8 = pneg %p2518_p4  ;;  %p2523_p11 = por %p2522_p10, %p2521_p9 }
  0xfa   : > { %v2033_v2 = vld [vmem:[#allocation10 + $0x64] sm:$0xf]  ;;  %v1844_v17 = vld [vmem:[#allocation10 + $0x80] sm:$0xf]  ;;  %v2038_v18 = vld [vmem:[#allocation10 + $0x88] sm:$0xf0]  ;;  %v1813_v19 = vor.u32 %v2031_v1, %v1812_v11 }
  0xfb   : > { %v1800_v20 = vld [vmem:[#allocation10 + $0x30] sm:$0xf]  ;;  %v2028_v21 = vld [vmem:[#allocation10 + $0x38] sm:$0xf0]  ;;  %v1829_v22 = vor.u32 %v2033_v2, %v1826_v16  ;;  %v1845_v23 = vor.u32 %v2038_v18, %v1844_v17  ;;  %v2030_v24 = vld [vmem:[#allocation10 + $0x4c] sm:$0xf]  ;;  %p2524_p12 = pnand %p2523_p11, %p2519_p8 }
  0xfc   : > { %775 = vmatpush.bf16.msra.mxu1 %v1837_v56  ;;  %788 = vmatpush.bf16.msra.mxu2 %v1853_v62  ;;  %v1814_v25 = vld [vmem:[#allocation10 + $0x54] sm:$0xf0]  ;;  %v1832_v26 = vld [vmem:[#allocation10 + $0x68] sm:$0xf]  ;;  %v2035_v27 = vld [vmem:[#allocation10 + $0x70] sm:$0xf0]  ;;  %v1801_v28 = vor.u32 %v2028_v21, %v1800_v20 }
  0xfd   : > { %597 = vmatpush.bf16.msra.mxu0 %v2911_v38  ;;  %v1788_v29 = vld [vmem:[#allocation10 + $0x18] sm:$0xf]  ;;  %v2025_v6 = vld [vmem:[#allocation10 + $0x20] sm:$0xf0]  ;;  %v1817_v30 = vor.u32 %v2030_v24, %v1814_v25  ;;  %v1833_v7 = vor.u32 %v2035_v27, %v1832_v26  ;;  %v1820_v31 = vld [vmem:[#allocation10 + $0x50] sm:$0xf] }
  0xfe   : > { %v2032_v32 = vld [vmem:[#allocation10 + $0x58] sm:$0xf0]  ;;  %v1789_v8 = vor.u32 %v2025_v6, %v1788_v29  ;;  %v1776_v33 = vld [vmem:[#allocation10] sm:$0xf]  ;;  %v2022_v39 = vld [vmem:[#allocation10 + $0x8] sm:$0xf0] }
  0xff   : > { %v1821_v40 = vor.u32 %v2032_v32, %v1820_v31  ;;  %v2066_v42 = vld [vmem:[#allocation11 + $0xac] sm:$0xf]  ;;  %v1958_v43 = vld [vmem:[#allocation11 + $0xb4] sm:$0xf0]  ;;  %v2029_v45 = vld [vmem:[#allocation10 + $0x40] sm:$0xf0]  ;;  %v1777_v48 = vor.u32 %v2022_v39, %v1776_v33 }
 0x100   : > { %776 = vmatpush.bf16.msra.mxu1 %v1825_v10  ;;  %789 = vmatpush.bf16.msra.mxu2 %v1841_v14  ;;  %v1808_v44 = vld [vmem:[#allocation10 + $0x38] sm:$0xf]  ;;  %v1961_v49 = vor.u32 %v2066_v42, %v1958_v43  ;;  %v1796_v52 = vld [vmem:[#allocation10 + $0x20] sm:$0xf]  ;;  %v2026_v53 = vld [vmem:[#allocation10 + $0x28] sm:$0xf0] }
 0x101   : > { %598 = vmatpush.bf16.msra.mxu0 %v2920_v46  ;;  %v1809_v51 = vor.u32 %v2029_v45, %v1808_v44  ;;  %v1797_v54 = vor.u32 %v2026_v53, %v1796_v52  ;;  %v1784_v55 = vld [vmem:[#allocation10 + $0x8] sm:$0xf]  ;;  %v2023_v56 = vld [vmem:[#allocation10 + $0x10] sm:$0xf0]  ;;  %v1944_v3 = vld [vmem:[#allocation11 + $0x90] sm:$0xf] }
 0x102   : > { %v1956_v57 = vld [vmem:[#allocation11 + $0xa8] sm:$0xf]  ;;  %v2067_v58 = vld [vmem:[#allocation11 + $0xb0] sm:$0xf0]  ;;  %v1785_v60 = vor.u32 %v2023_v56, %v1784_v55  ;;  %v2064_v5 = vld [vmem:[#allocation11 + $0x98] sm:$0xf0] }
 0x103   : > { %v1957_v61 = vor.u32 %v2067_v58, %v1956_v57  ;;  %v2027_v62 = vld [vmem:[#allocation10 + $0x34] sm:$0xf]  ;;  %v1945_v10 = vor.u32 %v2064_v5, %v1944_v3  ;;  %v2024_v1 = vld [vmem:[#allocation10 + $0x1c] sm:$0xf]  ;;  %v1790_v14 = vld [vmem:[#allocation10 + $0x24] sm:$0xf0] }
 0x104   : > { %777 = vmatpush.bf16.msra.mxu1 %v1813_v19  ;;  %790 = vmatpush.bf16.msra.mxu2 %v1829_v22  ;;  %v2063_v9 = vld [vmem:[#allocation11 + $0x94] sm:$0xf]  ;;  %v1793_v2 = vor.u32 %v2024_v1, %v1790_v14  ;;  %v2061_v16 = vld [vmem:[#allocation11 + $0x80] sm:$0xf0]  ;;  %v2060_v17 = vld [vmem:[#allocation11 + $0x7c] sm:$0xf] }
 0x105   : > { %599 = vmatpush.bf16.msra.mxu0 %v2929_v59  ;;  %v1934_v18 = vld [vmem:[#allocation11 + $0x84] sm:$0xf0]  ;;  %v2021_v21 = vld [vmem:[#allocation10 + $0x4] sm:$0xf]  ;;  %v1778_v22 = vld [vmem:[#allocation10 + $0xc] sm:$0xf0] }
 0x106   : > { %v1937_v20 = vor.u32 %v2060_v17, %v1934_v18  ;;  %v1781_v24 = vor.u32 %v2021_v21, %v1778_v22  ;;  %v2058_v25 = vld [vmem:[#allocation11 + $0x68] sm:$0xf0]  ;;  %v2057_v26 = vld [vmem:[#allocation11 + $0x64] sm:$0xf]  ;;  %v1922_v27 = vld [vmem:[#allocation11 + $0x6c] sm:$0xf0] }
 0x107   : > { %v1925_v29 = vor.u32 %v2057_v26, %v1922_v27  ;;  %v1908_v6 = vld [vmem:[#allocation11 + $0x48] sm:$0xf]  ;;  %v1910_v32 = vld [vmem:[#allocation11 + $0x54] sm:$0xf0]  ;;  %v2068_v33 = vld [vmem:[#allocation11 + $0xb8] sm:$0xf0] }
 0x108   : > { %1773 = vmatmul.msk.bf16.vlgmr.msra.gmra.mxu0 %vm588_vm8, %v2020_v0  ;;  %778 = vmatpush.bf16.msra.mxu1 %v1801_v28  ;;  %v1946_v0 = vld [vmem:[#allocation11 + $0x9c] sm:$0xf0]  ;;  %v1896_v42 = vld [vmem:[#allocation11 + $0x30] sm:$0xf]  ;;  %v2052_v43 = vld [vmem:[#allocation11 + $0x38] sm:$0xf0] }
 0x109   : > { %801 = vmatpush.bf16.msrb.mxu0 %v1869_v63  ;;  %791 = vmatpush.bf16.msra.mxu2 %v1817_v30  ;;  %v1802_v63 = vld [vmem:[#allocation10 + $0x3c] sm:$0xf0]  ;;  %v1949_v11 = vor.u32 %v2063_v9, %v1946_v0  ;;  %v2055_v30 = vld [vmem:[#allocation11 + $0x50] sm:$0xf0]  ;;  %v1897_v45 = vor.u32 %v2052_v43, %v1896_v42  ;;  %v2049_v55 = vld [vmem:[#allocation11 + $0x20] sm:$0xf0] }
 0x10a   : > { %v1805_v4 = vor.u32 %v2027_v62, %v1802_v63  ;;  %v1909_v31 = vor.u32 %v2055_v30, %v1908_v6  ;;  %v2051_v44 = vld [vmem:[#allocation11 + $0x34] sm:$0xf]  ;;  %v2048_v56 = vld [vmem:[#allocation11 + $0x1c] sm:$0xf]  ;;  %v1886_v57 = vld [vmem:[#allocation11 + $0x24] sm:$0xf0] }
 0x10b   : > { %v1940_v58 = vld [vmem:[#allocation11 + $0x80] sm:$0xf]  ;;  %v1889_v62 = vor.u32 %v2048_v56, %v1886_v57  ;;  %v2045_v5 = vld [vmem:[#allocation11 + $0x4] sm:$0xf]  ;;  %v1874_v9 = vld [vmem:[#allocation11 + $0xc] sm:$0xf0] }
 0x10c   : > { %779 = vmatpush.bf16.msra.mxu1 %v1789_v8  ;;  %v1964_v8 = vld [vmem:[#allocation11 + $0xb0] sm:$0xf]  ;;  %v1872_v3 = vld [vmem:[#allocation11] sm:$0xf]  ;;  %v1928_v0 = vld [vmem:[#allocation11 + $0x68] sm:$0xf]  ;;  %v1877_v1 = vor.u32 %v2045_v5, %v1874_v9 }
 0x10d   : > { %802 = vmatpush.bf16.msrb.mxu0 %v1857_v15  ;;  %792 = vmatpush.bf16.msra.mxu2 %v1805_v4  ;;  %v1932_v15 = vld [vmem:[#allocation11 + $0x78] sm:$0xf]  ;;  %v2046_v4 = vld [vmem:[#allocation11 + $0x8] sm:$0xf0]  ;;  %v2053_v18 = vld [vmem:[#allocation11 + $0x40] sm:$0xf0] }
 0x10e   : > { %v1933_v19 = vor.u32 %v2061_v16, %v1932_v15  ;;  %v1916_v15 = vld [vmem:[#allocation11 + $0x50] sm:$0xf]  ;;  %v1904_v17 = vld [vmem:[#allocation11 + $0x38] sm:$0xf]  ;;  %v1892_v21 = vld [vmem:[#allocation11 + $0x20] sm:$0xf] }
 0x10f   : > { %v2050_v22 = vld [vmem:[#allocation11 + $0x28] sm:$0xf0]  ;;  %v1880_v26 = vld [vmem:[#allocation11 + $0x8] sm:$0xf]  ;;  %v2047_v27 = vld [vmem:[#allocation11 + $0x10] sm:$0xf0] }
 0x110   : > { %780 = vmatpush.bf16.msra.mxu1 %v1777_v48  ;;  %v1898_v48 = vld [vmem:[#allocation11 + $0x3c] sm:$0xf0]  ;;  %v610_v5 = vld [vmem:[#allocation8 + $0x20] sm:$0xff] }
 0x111   : > { %803 = vmatpush.bf16.msrb.mxu0 %v1845_v23  ;;  %793 = vmatpush.bf16.msra.mxu2 %v1793_v2  ;;  %v1920_v23 = vld [vmem:[#allocation11 + $0x60] sm:$0xf]  ;;  %v1901_v52 = vor.u32 %v2051_v44, %v1898_v48  ;;  %v2056_v2 = vld [vmem:[#allocation11 + $0x58] sm:$0xf0]  ;;  %v1161_v44 = vmul.f32 %v2924_v50, %v2924_v50  ;;  %v1163_v48 = vmul.f32 %v2915_v41, %v2915_v41 }
 0x112   : > { %v1921_v28 = vor.u32 %v2058_v25, %v1920_v23  ;;  %v1917_v16 = vor.u32 %v2056_v2, %v1916_v15  ;;  %v1893_v25 = vor.u32 %v2050_v22, %v1892_v21  ;;  %v2073_v30 = vld [vmem:[#allocation13 + $0x20] sm:$0xff] }
 0x113   : > { %v2069_v43 = vld [vmem:[#allocation13] sm:$0xff] }
 0x114   : > { %1004 = vmatpush.bf16.msrb.mxu1 %v1961_v49  ;;  %v1952_v49 = vld [vmem:[#allocation11 + $0x98] sm:$0xf] }
 0x115   : > { %804 = vmatpush.bf16.msrb.mxu0 %v1833_v7  ;;  %794 = vmatpush.bf16.msra.mxu2 %v1781_v24  ;;  %v2054_v7 = vld [vmem:[#allocation11 + $0x4c] sm:$0xf]  ;;  %v2075_v24 = vld [vmem:[#allocation13 + $0x30] sm:$0xff] }
 0x116   : > { %v1913_v39 = vor.u32 %v2054_v7, %v1910_v32  ;;  %v1160_v32 = vmul.f32 %v2922_v47, %v2922_v47 }
 0x118   : > { %1005 = vmatpush.bf16.msrb.mxu1 %v1949_v11  ;;  %v1873_v11 = vor.u32 %v2046_v4, %v1872_v3  ;;  %1168 = vadd.xlane.f32.xlu0 %v1160_v32 }
 0x119   : > { %805 = vmatpush.bf16.msrb.mxu0 %v1821_v40  ;;  %v1965_v40 = vor.u32 %v2068_v33, %v1964_v8  ;;  %v2071_v8 = vld [vmem:[#allocation13 + $0x10] sm:$0xff] }
 0x11a   : > { %v2935_v33 = vld [vmem:[#allocation3] sm:$0xff] }
 0x11b   : > { %1018 = vmatpush.bf16.msrb.mxu2 %v1965_v40  ;;  %v2070_v40 = vld [vmem:[#allocation13 + $0x8] sm:$0xff] }
 0x11c   : > { %1006 = vmatpush.bf16.msrb.mxu1 %v1937_v20  ;;  %v2076_v20 = vld [vmem:[#allocation13 + $0x38] sm:$0xff] }
 0x11d   : > { %806 = vmatpush.bf16.msrb.mxu0 %v1809_v51  ;;  %v2065_v51 = vld [vmem:[#allocation11 + $0xa0] sm:$0xf0]  ;;  %1348 = vmatpush.bf16.msra.mxu3 %v2076_v20 }
 0x11e   : > { %v1953_v53 = vor.u32 %v2065_v51, %v1952_v49  ;;  %v1165_v49 = vmul.f32 %v2906_v37, %v2906_v37  ;;  %v1167_v37 = vmul.f32 %v2898_v35, %v2898_v35 }
 0x120   : > { %1007 = vmatpush.bf16.msrb.mxu1 %v1925_v29  ;;  %1019 = vmatpush.bf16.msrb.mxu2 %v1953_v53  ;;  %v1881_v29 = vor.u32 %v2047_v27, %v1880_v26 }
 0x121   : > { %807 = vmatpush.bf16.msrb.mxu0 %v1797_v54  ;;  %v1884_v54 = vld [vmem:[#allocation11 + $0x18] sm:$0xf]  ;;  %1349 = vmatpush.bf16.msra.mxu3 %v2075_v24 }
 0x122   : > { %1170 = vadd.xlane.f32.xlu0 %v1161_v44  ;;  %v2988_v44 = vld [vmem:[%s3293_s8] ss:$0 sm:$0xff] }
 0x124   : > { %1008 = vmatpush.bf16.msrb.mxu1 %v1913_v39  ;;  %v2937_v39 = vld [vmem:[#allocation3 + $0x8] sm:$0xff] }
 0x125   : > { %808 = vmatpush.bf16.msrb.mxu0 %v1785_v60  ;;  %v2062_v60 = vld [vmem:[#allocation11 + $0x88] sm:$0xf0]  ;;  %v821_v42 = vpack.c.bf16 %v2937_v39, %v2935_v33 }
 0x126   : > { %v1941_v63 = vor.u32 %v2062_v60, %v1940_v58 }
 0x128   : > { %1009 = vmatpush.bf16.msrb.mxu1 %v1901_v52  ;;  %1020 = vmatpush.bf16.msrb.mxu2 %v1941_v63 }
 0x129   : > { %990 = vmatpush.bf16.msra.mxu0 %v1957_v61  ;;  %v1885_v61 = vor.u32 %v2049_v55, %v1884_v54  ;;  %v1166_v54 = vmul.f32 %v2896_v34, %v2896_v34  ;;  %v606_v55 = vld [vmem:[#allocation8] sm:$0xff] }
 0x12b   : > { %1180 = vadd.xlane.f32.xlu0 %v1166_v54 }
 0x12c   : > { %1010 = vmatpush.bf16.msrb.mxu1 %v1889_v62 }
 0x12d   : > { %991 = vmatpush.bf16.msra.mxu0 %v1945_v10  ;;  %v2059_v10 = vld [vmem:[#allocation11 + $0x70] sm:$0xf0] }
 0x12e   : > { %v1929_v14 = vor.u32 %v2059_v10, %v1928_v0  ;;  %v609_v10 = vld [vmem:[#allocation8 + $0x18] sm:$0xff] }
 0x130   : > { %1011 = vmatpush.bf16.msrb.mxu1 %v1877_v1  ;;  %1021 = vmatpush.bf16.msrb.mxu2 %v1929_v14 }
 0x131   : > { %992 = vmatpush.bf16.msra.mxu0 %v1933_v19  ;;  %v1905_v19 = vor.u32 %v2053_v18, %v1904_v17 }
 0x134   : > { %1022 = vmatpush.bf16.msrb.mxu2 %v1917_v16 }
 0x135   : > { %993 = vmatpush.bf16.msra.mxu0 %v1921_v28  ;;  %v2074_v28 = vld [vmem:[#allocation13 + $0x28] sm:$0xff] }
 0x136   : > { %1350 = vmatpush.bf16.msra.mxu3 %v2074_v28 }
 0x138   : > { %1023 = vmatpush.bf16.msrb.mxu2 %v1905_v19 }
 0x139   : > { %994 = vmatpush.bf16.msra.mxu0 %v1909_v31  ;;  %v2072_v31 = vld [vmem:[#allocation13 + $0x18] sm:$0xff] }
 0x13a   : > { %1351 = vmatpush.bf16.msra.mxu3 %v2073_v30 }
 0x13c   : > { %1024 = vmatpush.bf16.msrb.mxu2 %v1893_v25 }
 0x13d   : > { %995 = vmatpush.bf16.msra.mxu0 %v1897_v45  ;;  %v1162_v45 = vmul.f32 %v2913_v13, %v2913_v13  ;;  %v2962_v13 = vld [vmem:[%s3291_s6] sm:$0x7] }
 0x13e   : > { %1352 = vmatpush.bf16.msra.mxu3 %v2072_v31  ;;  %v857_v52 = vperm.slane %v2962_v13, 1  ;;  %v856_v53 = vperm.slane %v2962_v13, 0 }
 0x13f   : > { %1172 = vadd.xlane.f32.xlu1 %v1162_v45 }
 0x140   : > { %1025 = vmatpush.bf16.msrb.mxu2 %v1881_v29 }
 0x141   : > { %996 = vmatpush.bf16.msra.mxu0 %v1885_v61 }
 0x142   : > { %1353 = vmatpush.bf16.msra.mxu3 %v2071_v8 }
 0x145   : > { %997 = vmatpush.bf16.msra.mxu0 %v1873_v11 }
 0x146   : > { %1354 = vmatpush.bf16.msra.mxu3 %v2070_v40 }
 0x147   : > { %1174 = vadd.xlane.f32.xlu1 %v1163_v48 }
 0x14a   : > { %1355 = vmatpush.bf16.msra.mxu3 %v2069_v43 }
 0x14d   : > { %1356 = vmatmul.bf16.vlgmr.msra.gmra.mxu3 %v2929_v59  ;;  %v1164_v59 = vmul.f32 %v2900_v36, %v2900_v36  ;;  %v607_v36 = vld [vmem:[#allocation8 + $0x8] sm:$0xff] }
 0x14f   : > { %1176 = vadd.xlane.f32.xlu2 %v1164_v59  ;;  %1182 = vadd.xlane.f32.xlu1 %v1167_v37 }
 0x157   : > { %1178 = vadd.xlane.f32.xlu2 %v1165_v49 }
 0x15d   : > { %1361 = vmatmul.bf16.gmra.mxu3 %v2920_v46 }
 0x16d   : > { %1366 = vmatmul.bf16.gmra.mxu3 %v2911_v38 }
 0x17d   : > { %1371 = vmatmul.bf16.gmra.mxu3 %v2904_v12 }
 0x185   : > { %v601_v23 = vpop.f32.mrf.mxu0 }
 0x18d   : > { %v603_v6 = vpop.f32.mrf.mxu0 }
 0x18e   : > { %v612_v7 = vpack.c.bf16 %v603_v6, %v601_v23 }
 0x190   : > { %781 = vmatmul.bf16.vlgmr.msra.gmra.mxu1 %v612_v7  ;;  %795 = vmatmul.bf16.vlgmr.msra.gmra.mxu2 %v612_v7 }
 0x191   : > { %809 = vmatmul.bf16.vlgmr.msrb.gmra.mxu0 %v612_v7  ;;  %v858_v7 = vperm.slane %v2962_v13, 2 }
 0x1a0   : > { %1012 = vmatmul.bf16.vlgmr.msrb.gmra.mxu1 %v821_v42  ;;  %1026 = vmatmul.bf16.vlgmr.msrb.gmra.mxu2 %v821_v42 }
 0x1a1   : > { %998 = vmatmul.bf16.vlgmr.msra.gmra.mxu0 %v821_v42 }
 0x1d0   : > { %v1357_v45 = vpop.f32.mrf.mxu3 }
 0x20d   : > { %v782_v46 = vpop.f32.mrf.mxu1 }
 0x20e   : > { %v2955_v38 = vpop.f32.mrf.mxu0  ;;  %v815_v61 = vadd.f32 %v782_v46, %v606_v55  ;;  %v1169_v46 = vpop.xlane.xlu0 %1168 }
 0x20f   : > { %v2996_v37 = vmax.f32 %v1169_v46, 1e-24 }
 0x211   : > { %vm1198_vm8 = vweird.f32 %v2996_v37 }
 0x213   : > { %v796_v41 = vpop.f32.mrf.mxu2 }
 0x214   : > { %v816_v57 = vadd.f32 %v796_v41, %v607_v36 }
 0x215   : > { %v784_v12 = vpop.f32.mrf.mxu1 }
 0x216   : > { %v2957_v51 = vpop.f32.mrf.mxu0  ;;  %v818_v14 = vadd.f32 %v784_v12, %v609_v10  ;;  %v608_v12 = vld [vmem:[#allocation8 + $0x10] sm:$0xff] }
 0x21b   : > { %v798_v9 = vpop.f32.mrf.mxu2 }
 0x21c   : > { %v819_v34 = vadd.f32 %v798_v9, %v610_v5 }
 0x21d   : > { %v1013_v56 = vpop.f32.mrf.mxu1 }
 0x21e   : > { %v999_v58 = vpop.f32.mrf.mxu0  ;;  %v1014_v60 = vadd.f32 %v1013_v56, %v857_v52 }
 0x21f   : > { %v1000_v62 = vadd.f32 %v999_v58, %v856_v53  ;;  %v817_v58 = vadd.f32 %v2955_v38, %v608_v12 }
 0x220   : > { %v1072_v63 = vadd.f32 %v1014_v60, %v816_v57 }
 0x221   : > { %v1032_v3 = vadd.f32 %v1000_v62, %v815_v61 }
 0x222   : > { %v1968_v4 = vmul.f32 -1.442695, %v1072_v63 }
 0x223   : > { %v1966_v0 = vmul.f32 -1.442695, %v1032_v3  ;;  %v1027_v31 = vpop.f32.mrf.mxu2 }
 0x224   : > { %2224 = vpow2.f32 %v1968_v4  ;;  %v1028_v59 = vadd.f32 %v1027_v31, %v858_v7 }
 0x225   : > { %2226 = vpow2.f32 %v1966_v0  ;;  %v1015_v35 = vpop.f32.mrf.mxu1 }
 0x226   : > { %v1001_v11 = vpop.f32.mrf.mxu0  ;;  %v1016_v1 = vadd.f32 %v1015_v35, %v857_v52  ;;  %v1358_v52 = vadd.f32 %v2988_v44, %v1357_v45 }
 0x227   : > { %v1002_v15 = vadd.f32 %v1001_v11, %v856_v53 }
 0x228   : > { %v1073_v2 = vadd.f32 %v1016_v1, %v819_v34  ;;  %v2002_v57 = vmul.f32 -1.442695, %v1358_v52  ;;  %v1359_v34 = vpop.f32.mrf.mxu3 }
 0x229   : > { %v1033_v16 = vadd.f32 %v1002_v15, %v818_v14  ;;  %v1360_v1 = vadd.f32 %v2988_v44, %v1359_v34  ;;  %v1171_v14 = vpop.xlane.xlu0 %1170 }
 0x22a   : > { %v2225_v17 = vpop.eup %2224  ;;  %v1969_v18 = vmul.f32 -1.442695, %v1073_v2 }
 0x22b   : > { %v2227_v19 = vpop.eup %2226  ;;  %v2970_v20 = vadd.f32 1.0, %v2225_v17  ;;  %v1967_v21 = vmul.f32 -1.442695, %v1033_v16  ;;  %v1029_v4 = vpop.f32.mrf.mxu2  ;;  %v3016_v16 = vmax.f32 %v1171_v14, 1e-24 }
 0x22c   : > { %v1040_v22 = vadd.f32 1.0, %v2227_v19  ;;  %2228 = vpow2.f32 %v1969_v18  ;;  %v1030_v15 = vadd.f32 %v1029_v4, %v858_v7  ;;  %v2003_v19 = vmul.f32 -1.442695, %v1360_v1 }
 0x22d   : > { %2230 = vrcp.f32 %v2970_v20  ;;  %v1093_v53 = vand.u32 2147483648, %v2970_v20  ;;  %vm1087_vm14 = vweird.f32 %v2970_v20  ;;  %v1091_v62 = vand.u32 2147483647, %v2970_v20 }
 0x22e   : > { %2232 = vrcp.f32 %v1040_v22  ;;  %v1053_v8 = vand.u32 2147483648, %v1040_v22  ;;  %v1051_v42 = vand.u32 2147483647, %v1040_v22  ;;  %vm1047_vm10 = vweird.f32 %v1040_v22 }
 0x22f   : > { %2234 = vpow2.f32 %v1967_v21  ;;  %v1094_v35 = vor.u32 1.1754944e-38, %v1093_v53  ;;  %vm1092_vm1 = vcmp.eq.f32.partialorder %v1091_v62, 8.507059e+37  ;;  %v611_v21 = vld [vmem:[#allocation8 + $0x28] sm:$0xff] }
 0x230   : > { %v1054_v13 = vor.u32 1.1754944e-38, %v1053_v8  ;;  %vm1052_vm12 = vcmp.eq.f32.partialorder %v1051_v42, 8.507059e+37  ;;  %v820_v31 = vadd.f32 %v2957_v51, %v611_v21  ;;  %v1362_v45 = vpop.f32.mrf.mxu3 }
 0x231   : > { %v1363_v46 = vadd.f32 %v2988_v44, %v1362_v45 }
 0x232   : > { %v2229_v23 = vpop.eup %2228 }
 0x233   : > { %v2973_v24 = vpop.eup %2230  ;;  %v2975_v25 = vadd.f32 1.0, %v2229_v23  ;;  %v2004_v52 = vmul.f32 -1.442695, %v1363_v46 }
 0x234   : > { %v2233_v26 = vpop.eup %2232  ;;  %v1083_v27 = vmul.f32 %v2973_v24, %v2970_v20  ;;  %vm1088_vm13 = vweird.f32 %v2973_v24 }
 0x235   : > { %v2235_v28 = vpop.eup %2234  ;;  %2236 = vrcp.f32 %v2975_v25  ;;  %v1043_v29 = vmul.f32 %v2233_v26, %v1040_v22  ;;  %vm1048_vm9 = vweird.f32 %v2233_v26  ;;  %vm3004_vm15 = vmor %vm1087_vm14, %vm1088_vm13  ;;  %v1108_v23 = vand.u32 2147483648, %v2975_v25 }
 0x236   : > { %v2980_v6 = vadd.f32 1.0, %v2235_v28  ;;  %v1084_v30 = vsub.f32 1.0, %v1083_v27  ;;  %vm1049_vm11 = vmor %vm1047_vm10, %vm1048_vm9  ;;  %vm1102_vm6 = vweird.f32 %v2975_v25  ;;  %v1106_v42 = vand.u32 2147483647, %v2975_v25 }
 0x237   : > { %v1044_v32 = vsub.f32 1.0, %v1043_v29  ;;  %v1109_v51 = vor.u32 1.1754944e-38, %v1108_v23  ;;  %vm1208_vm14 = vweird.f32 %v3016_v16 }
 0x238   : > { %2238 = vrcp.f32 %v2980_v6  ;;  %v1085_v43 = vmul.f32 %v2973_v24, %v1084_v30  ;;  %v1066_v38 = vand.u32 2147483647, %v2980_v6  ;;  %v1068_v0 = vand.u32 2147483648, %v2980_v6  ;;  %v1364_v9 = vpop.f32.mrf.mxu3 }
 0x239   : > { %v1045_v40 = vmul.f32 %v2233_v26, %v1044_v32  ;;  %2240 = vpow2.f32 %v2002_v57  ;;  %vm1062_vm2 = vweird.f32 %v2980_v6  ;;  %vm1107_vm10 = vcmp.eq.f32.partialorder %v1106_v42, 8.507059e+37 }
 0x23a   : > { %v1086_v56 = vadd.f32 %v2973_v24, %v1085_v43  ;;  %2242 = vrsqrt.f32 %v2996_v37  ;;  %vm1067_vm4 = vcmp.eq.f32.partialorder %v1066_v38, 8.507059e+37  ;;  %v1069_v22 = vor.u32 1.1754944e-38, %v1068_v0 }
 0x23b   : > { %v2990_v48 = vpop.eup %2236  ;;  %v1046_v49 = vadd.f32 %v2233_v26, %v1045_v40 }
 0x23c   : > { %v1098_v41 = vmul.f32 %v2990_v48, %v2975_v25  ;;  %v1090_v10 = vsel %vm3004_vm15, %v2973_v24, %v1086_v56  ;;  %vm1103_vm5 = vweird.f32 %v2990_v48 }
 0x23d   : > { %v1050_v36 = vsel %vm1049_vm11, %v2233_v26, %v1046_v49  ;;  %v1095_v18 = vsel %vm1092_vm1, %v1094_v35, %v1090_v10  ;;  %vm3037_vm7 = vmor %vm1102_vm6, %vm1103_vm5  ;;  %v1365_v35 = vadd.f32 %v2988_v44, %v1364_v9 }
 0x23e   : > { %v2239_v54 = vpop.eup %2238  ;;  %v1055_v55 = vsel %vm1052_vm12, %v1054_v13, %v1050_v36  ;;  %v1099_v63 = vsub.f32 1.0, %v1098_v41  ;;  %v1118_v29 = vsub.f32 1.0, %v1095_v18  ;;  %v1122_v40 = vmul.f32 %v1095_v18, %v2935_v33 }
 0x23f   : > { %v1112_v60 = vmul.f32 %v1055_v55, %v1028_v59  ;;  %v1058_v61 = vmul.f32 %v2239_v54, %v2980_v6  ;;  %vm1063_vm0 = vweird.f32 %v2239_v54  ;;  %v2241_v20 = vpop.eup %2240 }
 0x240   : > { %v1100_v2 = vmul.f32 %v2990_v48, %v1099_v63  ;;  %vm1064_vm3 = vmor %vm1062_vm2, %vm1063_vm0  ;;  %v3021_v24 = vpop.eup %2242  ;;  %v3024_v27 = vadd.f32 1.0, %v2241_v20 }
 0x241   : > { %v1114_v3 = vadd.f32 %v1112_v60, %v817_v58  ;;  %v1059_v5 = vsub.f32 1.0, %v1058_v61  ;;  %v1193_v30 = vmul.f32 %v3021_v24, %v2996_v37  ;;  %vm1199_vm9 = vweird.f32 %v3021_v24 }
 0x242   : > { %v1101_v6 = vadd.f32 %v2990_v48, %v1100_v2  ;;  %vm3059_vm11 = vmor %vm1198_vm8, %vm1199_vm9  ;;  %v1420_v61 = vand.u32 2147483648, %v3024_v27  ;;  %v1418_v63 = vand.u32 2147483647, %v3024_v27  ;;  %vm1414_vm12 = vweird.f32 %v3024_v27 }
 0x243   : > { %2244 = vtanh.f32 %v1114_v3  ;;  %v1060_v11 = vmul.f32 %v2239_v54, %v1059_v5  ;;  %v1194_v43 = vmul.f32 %v3021_v24, %v1193_v30 }
 0x244   : > { %2246 = vrsqrt.f32 %v3016_v16  ;;  %v1105_v33 = vsel %vm3037_vm7, %v2990_v48, %v1101_v6  ;;  %v1421_v14 = vor.u32 1.1754944e-38, %v1420_v61  ;;  %vm3081_vm1 = vcmp.eq.f32.partialorder %v1418_v63, 8.507059e+37 }
 0x245   : > { %v1061_v17 = vadd.f32 %v2239_v54, %v1060_v11  ;;  %2248 = vpow2.f32 %v2003_v19  ;;  %v1195_v25 = vmul.f32 0.5, %v1194_v43  ;;  %v1110_v57 = vsel %vm1107_vm10, %v1109_v51, %v1105_v33 }
 0x246   : > { %2250 = vrcp.f32 %v3024_v27  ;;  %v1119_v4 = vsub.f32 1.0, %v1110_v57  ;;  %v1123_v37 = vmul.f32 %v1110_v57, %v2937_v39 }
 0x247   : > { %v1065_v26 = vsel %vm1064_vm3, %v2239_v54, %v1061_v17  ;;  %v1196_v55 = vsub.f32 1.5, %v1195_v25  ;;  %v2005_v17 = vmul.f32 -1.442695, %v1365_v35  ;;  %v1367_v25 = vpop.f32.mrf.mxu3 }
 0x248   : > { %v1070_v28 = vsel %vm1067_vm4, %v1069_v22, %v1065_v26 }
 0x249   : > { %v2245_v7 = vpop.eup %2244  ;;  %v1113_v32 = vmul.f32 %v1070_v28, %v1030_v15  ;;  %v1197_v62 = vmul.f32 %v3021_v24, %v1196_v55  ;;  %v1173_v55 = vpop.xlane.xlu1 %1172 }
 0x24a   : > { %v1120_v8 = vmul.f32 %v2245_v7, %v1118_v29  ;;  %v3042_v12 = vpop.eup %2246  ;;  %v1186_v57 = vmax.f32 %v1173_v55, 1e-24 }
 0x24b   : > { %v1115_v59 = vadd.f32 %v1113_v32, %v820_v31  ;;  %v2249_v41 = vpop.eup %2248  ;;  %v1203_v36 = vmul.f32 %v3042_v12, %v3016_v16  ;;  %v1201_v0 = vsel %vm3059_vm11, %v3021_v24, %v1197_v62  ;;  %vm1209_vm15 = vweird.f32 %v3042_v12 }
 0x24c   : > { %v3044_v13 = vadd.f32 %v1122_v40, %v1120_v8  ;;  %v1402_v54 = vadd.f32 1.0, %v2249_v41  ;;  %v2251_v56 = vpop.eup %2250  ;;  %v1272_v15 = vmul.f32 %v1201_v0, %v2922_v47  ;;  %vm3092_vm3 = vmor %vm1208_vm14, %vm1209_vm15 }
 0x24d   : > { %2252 = vtanh.f32 %v1115_v59  ;;  %v1204_v48 = vmul.f32 %v3042_v12, %v1203_v36  ;;  %v1410_v58 = vmul.f32 %v2251_v56, %v3024_v27  ;;  %vm1415_vm13 = vweird.f32 %v2251_v56 }
 0x24e   : > { %v1126_v53 = vmul.f32 %v3044_v13, %v3044_v13  ;;  %2254 = vpow2.f32 %v2004_v52  ;;  %vm3077_vm0 = vmor %vm1414_vm12, %vm1415_vm13  ;;  %vm1429_vm2 = vweird.f32 %v1402_v54  ;;  %v1435_v27 = vand.u32 2147483648, %v1402_v54 }
 0x24f   : > { %2256 = vrcp.f32 %v1402_v54  ;;  %v1205_v3 = vmul.f32 0.5, %v1204_v48  ;;  %v1411_v5 = vsub.f32 1.0, %v1410_v58  ;;  %v1433_v16 = vand.u32 2147483647, %v1402_v54  ;;  %v1369_v63 = vpop.f32.mrf.mxu3 }
 0x250   : > { %1128 = vadd.xlane.f32.xlu2 %v1126_v53  ;;  %2258 = vpow2.f32 %v2005_v17  ;;  %v1436_v8 = vor.u32 1.1754944e-38, %v1435_v27  ;;  %v1368_v52 = vadd.f32 %v2988_v44, %v1367_v25  ;;  %vm1218_vm13 = vweird.f32 %v1186_v57 }
 0x251   : > { %v1206_v10 = vsub.f32 1.5, %v1205_v3  ;;  %v1412_v11 = vmul.f32 %v2251_v56, %v1411_v5  ;;  %vm1434_vm6 = vcmp.eq.f32.partialorder %v1433_v16, 8.507059e+37  ;;  %v1370_v5 = vadd.f32 %v2988_v44, %v1369_v63  ;;  %v1175_v0 = vpop.xlane.xlu1 %1174 }
 0x253   : > { %v2253_v38 = vpop.eup %2252  ;;  %v1413_v20 = vadd.f32 %v2251_v56, %v1412_v11  ;;  %v1207_v22 = vmul.f32 %v3042_v12, %v1206_v10  ;;  %v2007_v10 = vmul.f32 -1.442695, %v1370_v5  ;;  %v1187_v11 = vmax.f32 %v1175_v0, 1e-24 }
 0x254   : > { %v1121_v34 = vmul.f32 %v2253_v38, %v1119_v4  ;;  %v2255_v1 = vpop.eup %2254 }
 0x255   : > { %v2257_v18 = vpop.eup %2256  ;;  %v3087_v21 = vadd.f32 1.0, %v2255_v1  ;;  %v1417_v28 = vsel %vm3077_vm0, %v2251_v56, %v1413_v20  ;;  %v1211_v31 = vsel %vm3092_vm3, %v3042_v12, %v1207_v22 }
 0x256   : > { %v3085_v19 = vadd.f32 %v1123_v37, %v1121_v34  ;;  %v1425_v23 = vmul.f32 %v2257_v18, %v1402_v54  ;;  %v1422_v6 = vsel %vm3081_vm1, %v1421_v14, %v1417_v28  ;;  %vm1430_vm4 = vweird.f32 %v2257_v18  ;;  %v2259_v42 = vpop.eup %2258 }
 0x257   : > { %2260 = vrcp.f32 %v3087_v21  ;;  %v1529_v30 = vmul.f32 %v1422_v6, %v1272_v15  ;;  %v1537_v7 = vsub.f32 1.0, %v1422_v6  ;;  %vm1431_vm5 = vmor %vm1429_vm2, %vm1430_vm4  ;;  %v1273_v43 = vmul.f32 %v1211_v31, %v2924_v50  ;;  %v1372_v22 = vpop.f32.mrf.mxu3 }
 0x258   : > { %v1127_v26 = vmul.f32 %v3085_v19, %v3085_v19  ;;  %v1426_v29 = vsub.f32 1.0, %v1425_v23  ;;  %v3109_v51 = vadd.f32 1.0, %v2259_v42  ;;  %v2006_v54 = vmul.f32 -1.442695, %v1368_v52 }
 0x259   : > { %v1545_v40 = vmul.f32 %v1537_v7, %v2922_v47  ;;  %vm1444_vm7 = vweird.f32 %v3087_v21  ;;  %v1450_v62 = vand.u32 2147483648, %v3087_v21  ;;  %v1373_v24 = vadd.f32 %v2988_v44, %v1372_v22 }
 0x25a   : > { %1130 = vadd.xlane.f32.xlu0 %v1127_v26  ;;  %v1427_v32 = vmul.f32 %v2257_v18, %v1426_v29  ;;  %2262 = vrcp.f32 %v3109_v51  ;;  %vm1459_vm11 = vweird.f32 %v3109_v51  ;;  %v1465_v2 = vand.u32 2147483648, %v3109_v51 }
 0x25b   : > { %v1553_v49 = vadd.f32 %v1545_v40, %v1529_v30  ;;  %2264 = vpow2.f32 %v2006_v54  ;;  %v1451_v34 = vor.u32 1.1754944e-38, %v1450_v62  ;;  %v2008_v7 = vmul.f32 -1.442695, %v1373_v24  ;;  %v2299_v62 = vld [vmem:[#allocation2 + $0x28] sm:$0xff] }
 0x25c   : > { %v1428_v45 = vadd.f32 %v2257_v18, %v1427_v32  ;;  %2266 = vrsqrt.f32 %v1186_v57  ;;  %v1466_v6 = vor.u32 1.1754944e-38, %v1465_v2  ;;  %vm1228_vm2 = vweird.f32 %v1187_v11 }
 0x25d   : > { %v2261_v59 = vpop.eup %2260  ;;  %1561 = vst [vmem:[#allocation2] sm:$0xff] %v1553_v49 }
 0x25e   : > { %v1440_v46 = vmul.f32 %v2261_v59, %v3087_v21  ;;  %v1432_v33 = vsel %vm1431_vm5, %v2257_v18, %v1428_v45  ;;  %vm1445_vm8 = vweird.f32 %v2261_v59  ;;  %v1463_v18 = vand.u32 2147483647, %v3109_v51 }
 0x25f   : > { %v1437_v12 = vsel %vm1434_vm6, %v1436_v8, %v1432_v33  ;;  %vm3124_vm9 = vmor %vm1444_vm7, %vm1445_vm8 }
 0x260   : > { %v1530_v47 = vmul.f32 %v1437_v12, %v1273_v43  ;;  %v1538_v41 = vsub.f32 1.0, %v1437_v12  ;;  %v1441_v36 = vsub.f32 1.0, %v1440_v46  ;;  %v3115_v48 = vpop.eup %2262  ;;  %vm3155_vm1 = vcmp.eq.f32.partialorder %v1463_v18, 8.507059e+37  ;;  %v1177_v43 = vpop.xlane.xlu2 %1176  ;;  %v2296_v46 = vld [vmem:[#allocation2 + $0x10] sm:$0xff] }
 0x261   : > { %v1455_v61 = vmul.f32 %v3115_v48, %v3109_v51  ;;  %v2265_v9 = vpop.eup %2264  ;;  %vm1460_vm12 = vweird.f32 %v3115_v48 }
 0x262   : > { %v1546_v53 = vmul.f32 %v1538_v41, %v2924_v50  ;;  %v1442_v58 = vmul.f32 %v2261_v59, %v1441_v36  ;;  %v1448_v50 = vand.u32 2147483647, %v3087_v21  ;;  %v3128_v37 = vadd.f32 1.0, %v2265_v9  ;;  %v2267_v35 = vpop.eup %2266  ;;  %vm3139_vm15 = vmor %vm1459_vm11, %vm1460_vm12 }
 0x263   : > { %v1456_v3 = vsub.f32 1.0, %v1455_v61  ;;  %v1213_v14 = vmul.f32 %v2267_v35, %v1186_v57  ;;  %vm1219_vm14 = vweird.f32 %v2267_v35 }
 0x264   : > { %v1554_v56 = vadd.f32 %v1546_v53, %v1530_v47  ;;  %v1443_v4 = vadd.f32 %v2261_v59, %v1442_v58  ;;  %vm1449_vm10 = vcmp.eq.f32.partialorder %v1448_v50, 8.507059e+37  ;;  %2268 = vrcp.f32 %v3128_v37  ;;  %vm3146_vm0 = vmor %vm1218_vm13, %vm1219_vm14  ;;  %v1374_v50 = vpop.f32.mrf.mxu3 }
 0x265   : > { %v1457_v1 = vmul.f32 %v3115_v48, %v1456_v3  ;;  %2270 = vrsqrt.f32 %v1187_v11  ;;  %v1214_v39 = vmul.f32 %v2267_v35, %v1213_v14  ;;  %vm1474_vm4 = vweird.f32 %v3128_v37 }
 0x266   : > { %1562 = vst [vmem:[#allocation2 + $0x8] sm:$0xff] %v1554_v56  ;;  %v2081_v60 = vpack.c.bf16 %v1554_v56, %v1553_v49  ;;  %v1447_v15 = vsel %vm3124_vm9, %v2261_v59, %v1443_v4  ;;  %2272 = vpow2.f32 %v2007_v10  ;;  %v3161_v49 = vmax.f32 %v1177_v43, 1e-24  ;;  %v2297_v10 = vld [vmem:[#allocation2 + $0x18] sm:$0xff] }
 0x267   : > { %v1452_v17 = vsel %vm1449_vm10, %v1451_v34, %v1447_v15  ;;  %v1215_v20 = vmul.f32 0.5, %v1214_v39  ;;  %v1458_v21 = vadd.f32 %v3115_v48, %v1457_v1  ;;  %2274 = vpow2.f32 %v2008_v7 }
 0x268   : > { %2082 = vst [vmem:[%s2823_s5] sm:$0xff] %v2081_v60   ;;  %v1539_v28 = vsub.f32 1.0, %v1452_v17  ;;  %v1480_v53 = vand.u32 2147483648, %v3128_v37  ;;  %v1478_v55 = vand.u32 2147483647, %v3128_v37  ;;  %v1375_v4 = vadd.f32 %v2988_v44, %v1374_v50  ;;  %v1179_v0 = vpop.xlane.xlu2 %1178 }
 0x269   : > { %v1216_v27 = vsub.f32 1.5, %v1215_v20  ;;  %v1462_v40 = vsel %vm3139_vm15, %v3115_v48, %v1458_v21  ;;  %v1189_v14 = vmax.f32 %v1179_v0, 1e-24  ;;  %vm1238_vm9 = vweird.f32 %v3161_v49 }
 0x26a   : > { %v3144_v26 = vpop.eup %2268  ;;  %v1547_v33 = vmul.f32 %v2296_v46, %v1539_v28  ;;  %v1467_v52 = vsel %vm3155_vm1, %v1466_v6, %v1462_v40  ;;  %v1481_v9 = vor.u32 1.1754944e-38, %v1480_v53  ;;  %vm1479_vm8 = vcmp.eq.f32.partialorder %v1478_v55, 8.507059e+37 }
 0x26b   : > { %v2271_v29 = vpop.eup %2270  ;;  %v1470_v30 = vmul.f32 %v3144_v26, %v3128_v37  ;;  %v1217_v32 = vmul.f32 %v2267_v35, %v1216_v27  ;;  %vm1475_vm5 = vweird.f32 %v3144_v26  ;;  %v1540_v58 = vsub.f32 1.0, %v1467_v52 }
 0x26c   : > { %v2273_v31 = vpop.eup %2272  ;;  %v1223_v8 = vmul.f32 %v2271_v29, %v1187_v11  ;;  %vm1229_vm3 = vweird.f32 %v2271_v29  ;;  %vm3179_vm7 = vmor %vm1474_vm4, %vm1475_vm5  ;;  %v2009_v2 = vmul.f32 -1.442695, %v1375_v4 }
 0x26d   : > { %v1471_v45 = vsub.f32 1.0, %v1470_v30  ;;  %v3159_v59 = vadd.f32 1.0, %v2273_v31  ;;  %v1221_v51 = vsel %vm3146_vm0, %v2267_v35, %v1217_v32  ;;  %v2275_v56 = vpop.eup %2274  ;;  %vm3174_vm6 = vmor %vm1228_vm2, %vm1229_vm3  ;;  %v1548_v34 = vmul.f32 %v2297_v10, %v1540_v58 }
 0x26e   : > { %v1224_v25 = vmul.f32 %v2271_v29, %v1223_v8  ;;  %v1274_v12 = vmul.f32 %v2296_v46, %v1221_v51  ;;  %v3185_v3 = vadd.f32 1.0, %v2275_v56  ;;  %v2298_v8 = vld [vmem:[#allocation2 + $0x20] sm:$0xff]  ;;  %vm1248_vm0 = vweird.f32 %v1189_v14 }
 0x26f   : > { %v1472_v47 = vmul.f32 %v3144_v26, %v1471_v45  ;;  %2276 = vrcp.f32 %v3159_v59  ;;  %vm1489_vm11 = vweird.f32 %v3159_v59  ;;  %v1495_v22 = vand.u32 2147483648, %v3159_v59 }
 0x270   : > { %v1225_v41 = vmul.f32 0.5, %v1224_v25  ;;  %2278 = vrsqrt.f32 %v3161_v49  ;;  %v1531_v36 = vmul.f32 %v1452_v17, %v1274_v12  ;;  %v1493_v27 = vand.u32 2147483647, %v3159_v59 }
 0x271   : > { %v1473_v60 = vadd.f32 %v3144_v26, %v1472_v47  ;;  %2280 = vrcp.f32 %v3185_v3  ;;  %v1496_v7 = vor.u32 1.1754944e-38, %v1495_v22  ;;  %vm1504_vm3 = vweird.f32 %v3185_v3 }
 0x272   : > { %v1226_v54 = vsub.f32 1.5, %v1225_v41  ;;  %v1555_v57 = vadd.f32 %v1547_v33, %v1531_v36  ;;  %2282 = vrsqrt.f32 %v1189_v14  ;;  %vm1494_vm15 = vcmp.eq.f32.partialorder %v1493_v27, 8.507059e+37  ;;  %v1183_v41 = vpop.xlane.xlu1 %1182 }
 0x273   : > { %v1477_v1 = vsel %vm3179_vm7, %v3144_v26, %v1473_v60  ;;  %2284 = vpow2.f32 %v2009_v2  ;;  %v1191_v53 = vmax.f32 %v1183_v41, 1e-24  ;;  %v1510_v58 = vand.u32 2147483648, %v3185_v3 }
 0x274   : > { %v1227_v61 = vmul.f32 %v2271_v29, %v1226_v54  ;;  %1563 = vst [vmem:[#allocation2 + $0x10] sm:$0xff] %v1555_v57  ;;  %v1482_v18 = vsel %vm1479_vm8, %v1481_v9, %v1477_v1  ;;  %v1508_v0 = vand.u32 2147483647, %v3185_v3 }
 0x275   : > { %v3183_v63 = vpop.eup %2276  ;;  %v1541_v26 = vsub.f32 1.0, %v1482_v18 }
 0x276   : > { %v2279_v5 = vpop.eup %2278  ;;  %v1231_v38 = vsel %vm3174_vm6, %v2271_v29, %v1227_v61  ;;  %v1485_v37 = vmul.f32 %v3183_v63, %v3159_v59  ;;  %vm1490_vm12 = vweird.f32 %v3183_v63 }
 0x277   : > { %v1275_v35 = vmul.f32 %v2297_v10, %v1231_v38  ;;  %v1233_v11 = vmul.f32 %v2279_v5, %v3161_v49  ;;  %vm1239_vm10 = vweird.f32 %v2279_v5  ;;  %v3206_v29 = vpop.eup %2280  ;;  %vm3209_vm14 = vmor %vm1489_vm11, %vm1490_vm12  ;;  %v1549_v40 = vmul.f32 %v2298_v8, %v1541_v26 }
 0x278   : > { %v1486_v44 = vsub.f32 1.0, %v1485_v37  ;;  %vm1240_vm13 = vmor %vm1238_vm9, %vm1239_vm10  ;;  %v2283_v30 = vpop.eup %2282  ;;  %v1500_v45 = vmul.f32 %v3206_v29, %v3185_v3  ;;  %vm1505_vm4 = vweird.f32 %v3206_v29  ;;  %vm1509_vm10 = vcmp.eq.f32.partialorder %v1508_v0, 8.507059e+37 }
 0x279   : > { %v1532_v15 = vmul.f32 %v1467_v52, %v1275_v35  ;;  %v1234_v39 = vmul.f32 %v2279_v5, %v1233_v11  ;;  %v2285_v31 = vpop.eup %2284  ;;  %v1243_v42 = vmul.f32 %v2283_v30, %v1189_v14  ;;  %vm1249_vm1 = vweird.f32 %v2283_v30  ;;  %v1181_v52 = vpop.xlane.xlu0 %1180  ;;  %vm3226_vm7 = vmor %vm1504_vm3, %vm1505_vm4 }
 0x27a   : > { %v1487_v17 = vmul.f32 %v3183_v63, %v1486_v44  ;;  %v1408_v49 = vadd.f32 1.0, %v2285_v31  ;;  %v1501_v47 = vsub.f32 1.0, %v1500_v45  ;;  %v1190_v54 = vmax.f32 %v1181_v52, 1e-24  ;;  %vm1250_vm2 = vmor %vm1248_vm0, %vm1249_vm1 }
 0x27b   : > { %v1556_v20 = vadd.f32 %v1548_v34, %v1532_v15  ;;  %v1235_v21 = vmul.f32 0.5, %v1234_v39  ;;  %v1244_v51 = vmul.f32 %v2283_v30, %v1243_v42  ;;  %v1511_v39 = vor.u32 1.1754944e-38, %v1510_v58 }
 0x27c   : > { %v1488_v28 = vadd.f32 %v3183_v63, %v1487_v17  ;;  %2286 = vrcp.f32 %v1408_v49  ;;  %v1502_v48 = vmul.f32 %v3206_v29, %v1501_v47  ;;  %v1525_v4 = vand.u32 2147483648, %v1408_v49 }
 0x27d   : > { %1564 = vst [vmem:[#allocation2 + $0x18] sm:$0xff] %v1556_v20  ;;  %v2086_v23 = vpack.c.bf16 %v1556_v20, %v1555_v57  ;;  %v1236_v24 = vsub.f32 1.5, %v1235_v21  ;;  %v1245_v33 = vmul.f32 0.5, %v1244_v51  ;;  %2288 = vrsqrt.f32 %v1191_v53 }
 0x27e   : > { %v1492_v59 = vsel %vm3209_vm14, %v3183_v63, %v1488_v28  ;;  %2290 = vrsqrt.f32 %v1190_v54  ;;  %vm1519_vm5 = vweird.f32 %v1408_v49  ;;  %v1523_v9 = vand.u32 2147483647, %v1408_v49 }
 0x27f   : > { %2098 = vst [vmem:[%s2823_s5 + $0x8] sm:$0xff] %v2086_v23   ;;  %v1237_v6 = vmul.f32 %v2279_v5, %v1236_v24  ;;  %v1497_v25 = vsel %vm1494_vm15, %v1496_v7, %v1492_v59  ;;  %v1246_v36 = vsub.f32 1.5, %v1245_v33  ;;  %v1503_v37 = vadd.f32 %v3206_v29, %v1502_v48 }
 0x280   : > { %v1542_v55 = vsub.f32 1.0, %v1497_v25  ;;  %v1526_v15 = vor.u32 1.1754944e-38, %v1525_v4  ;;  %vm1524_vm9 = vcmp.eq.f32.partialorder %v1523_v9, 8.507059e+37  ;;  %vm1268_vm11 = vweird.f32 %v1191_v53 }
 0x281   : > { %v1241_v32 = vsel %vm1240_vm13, %v2279_v5, %v1237_v6  ;;  %v1247_v56 = vmul.f32 %v2283_v30, %v1246_v36  ;;  %v1507_v20 = vsel %vm3226_vm7, %v3206_v29, %v1503_v37  ;;  %vm1258_vm13 = vweird.f32 %v1190_v54 }
 0x282   : > { %v1276_v43 = vmul.f32 %v2298_v8, %v1241_v32  ;;  %v2287_v57 = vpop.eup %2286  ;;  %v1550_v63 = vmul.f32 %v2299_v62, %v1542_v55  ;;  %v1512_v27 = vsel %vm1509_vm10, %v1511_v39, %v1507_v20  ;;  %v2300_v32 = vld [vmem:[#allocation2 + $0x38] sm:$0xff] }
 0x283   : > { %v1251_v60 = vsel %vm1250_vm2, %v2283_v30, %v1247_v56  ;;  %v1515_v61 = vmul.f32 %v2287_v57, %v1408_v49  ;;  %vm1520_vm6 = vweird.f32 %v2287_v57  ;;  %v2289_v10 = vpop.eup %2288  ;;  %v1543_v30 = vsub.f32 1.0, %v1512_v27 }
 0x284   : > { %v1533_v46 = vmul.f32 %v1482_v18, %v1276_v43  ;;  %v1277_v50 = vmul.f32 %v2299_v62, %v1251_v60  ;;  %v2291_v11 = vpop.eup %2290  ;;  %v1263_v44 = vmul.f32 %v2289_v10, %v1191_v53  ;;  %vm3230_vm8 = vmor %vm1519_vm5, %vm1520_vm6  ;;  %vm1269_vm12 = vweird.f32 %v2289_v10  ;;  %v2301_v43 = vld [vmem:[#allocation2 + $0x30] sm:$0xff] }
 0x285   : > { %v1516_v5 = vsub.f32 1.0, %v1515_v61  ;;  %v1253_v17 = vmul.f32 %v2291_v11, %v1190_v54  ;;  %vm1259_vm14 = vweird.f32 %v2291_v11  ;;  %vm1270_vm15 = vmor %vm1268_vm11, %vm1269_vm12  ;;  %v1551_v59 = vmul.f32 %v2301_v43, %v1543_v30 }
 0x286   : > { %v1557_v12 = vadd.f32 %v1549_v40, %v1533_v46  ;;  %v1534_v38 = vmul.f32 %v1497_v25, %v1277_v50  ;;  %v1264_v3 = vmul.f32 %v2289_v10, %v1263_v44  ;;  %vm1260_vm0 = vmor %vm1258_vm13, %vm1259_vm14 }
 0x287   : > { %v1517_v35 = vmul.f32 %v2287_v57, %v1516_v5  ;;  %v1254_v22 = vmul.f32 %v2291_v11, %v1253_v17 }
 0x288   : > { %1565 = vst [vmem:[#allocation2 + $0x20] sm:$0xff] %v1557_v12  ;;  %v1558_v1 = vadd.f32 %v1550_v63, %v1534_v38  ;;  %v1265_v23 = vmul.f32 0.5, %v1264_v3 }
 0x289   : > { %v1518_v2 = vadd.f32 %v2287_v57, %v1517_v35  ;;  %v1255_v26 = vmul.f32 0.5, %v1254_v22 }
 0x28a   : > { %1566 = vst [vmem:[#allocation2 + $0x28] sm:$0xff] %v1558_v1  ;;  %v2091_v18 = vpack.c.bf16 %v1558_v1, %v1557_v12  ;;  %v1266_v28 = vsub.f32 1.5, %v1265_v23 }
 0x28b   : > { %v1522_v21 = vsel %vm3230_vm8, %v2287_v57, %v1518_v2  ;;  %v1256_v16 = vsub.f32 1.5, %v1255_v26 }
 0x28c   : > { %2099 = vst [vmem:[%s2823_s5 + $0x10] sm:$0xff] %v2091_v18   ;;  %v1527_v24 = vsel %vm1524_vm9, %v1526_v15, %v1522_v21  ;;  %v1267_v29 = vmul.f32 %v2289_v10, %v1266_v28 }
 0x28d   : > { %v1544_v6 = vsub.f32 1.0, %v1527_v24  ;;  %v1257_v7 = vmul.f32 %v2291_v11, %v1256_v16 }
 0x28e   : > { %v1271_v31 = vsel %vm1270_vm15, %v2289_v10, %v1267_v29 }
 0x28f   : > { %v1279_v8 = vmul.f32 %v2300_v32, %v1271_v31  ;;  %v1552_v40 = vmul.f32 %v2300_v32, %v1544_v6  ;;  %v1261_v42 = vsel %vm1260_vm0, %v2291_v11, %v1257_v7 }
 0x290   : > { %v1278_v45 = vmul.f32 %v2301_v43, %v1261_v42 }
 0x291   : > { %v1536_v49 = vmul.f32 %v1527_v24, %v1279_v8 }
 0x292   : > { %v1535_v51 = vmul.f32 %v1512_v27, %v1278_v45 }
 0x293   : > { %v1560_v46 = vadd.f32 %v1552_v40, %v1536_v49 }
 0x294   : > { %v1559_v33 = vadd.f32 %v1551_v59, %v1535_v51 }
 0x295   : > { %1568 = vst [vmem:[#allocation2 + $0x38] sm:$0xff] %v1560_v46 }
 0x296   : > { %1567 = vst [vmem:[#allocation2 + $0x30] sm:$0xff] %v1559_v33  ;;  %v2096_v25 = vpack.c.bf16 %v1560_v46, %v1559_v33 }
 0x298   : > { %2100 = vst [vmem:[%s2823_s5 + $0x18] sm:$0xff] %v2096_v25  }
 0x299   : > { %2527 = shalt.err (!%p2524_p12)
}
 0x29a   : > { %s2624_s29 = smov 64   ;;  %s2625_s5 = smov 4  }
 0x29b   : > { %2119 = dma.vmem_to_hbm [thread:$0]  (%p2774_p5), %s1599_s26, 512, %s1601_s11, %s1586_s27, %s2624_s29, %s2624_s29, %s2625_s5  }
 0x29c   : > { %s2626_s25 = smov [#allocation15]   ;;  %s1614_s26 = sshll.u32 %s3295_s10, 4  ;;  %s1615_s26 = int_to_ptr.hbm [resolvable:$true] %s1614_s26 }
 0x29d   : > { %s1612_s21 = sshll.u32 %s2626_s25, 4  ;;  %s2627_s11 = smov 128   ;;  %s1613_s21 = int_to_ptr.vmem [resolvable:$true] %s1612_s21 }
 0x29e   : > { %s2628_s27 = smov 8   ;;  %p3346_p5 = scmp.eq.s32.totalorder %s2705_s17, 3 }
 0x2a0   : > { %p3347_p13 = pmov %p3346_p5 }
 0x2c3   : > { %v1129_v12 = vpop.xlane.xlu2 %1128 }
 0x2c4   : > { %v1132_v47 = vmax.f32 %v1129_v12, 1e-24 }
 0x2c6   : > { %2292 = vrsqrt.f32 %v1132_v47  ;;  %vm1140_vm2 = vweird.f32 %v1132_v47 }
 0x2cc   : > { %v2293_v41 = vpop.eup %2292 }
 0x2cd   : > { %v1135_v52 = vmul.f32 %v2293_v41, %v1132_v47  ;;  %v1131_v36 = vpop.xlane.xlu0 %1130  ;;  %vm1141_vm1 = vweird.f32 %v2293_v41 }
 0x2ce   : > { %v1133_v53 = vmax.f32 %v1131_v36, 1e-24  ;;  %vm1142_vm3 = vmor %vm1140_vm2, %vm1141_vm1 }
 0x2cf   : > { %v1136_v54 = vmul.f32 %v2293_v41, %v1135_v52 }
 0x2d0   : > { %2294 = vrsqrt.f32 %v1133_v53  ;;  %vm1150_vm5 = vweird.f32 %v1133_v53 }
 0x2d1   : > { %v1137_v55 = vmul.f32 0.5, %v1136_v54 }
 0x2d3   : > { %v1138_v56 = vsub.f32 1.5, %v1137_v55 }
 0x2d5   : > { %v1139_v57 = vmul.f32 %v2293_v41, %v1138_v56 }
 0x2d6   : > { %v2295_v48 = vpop.eup %2294 }
 0x2d7   : > { %v1143_v58 = vsel %vm1142_vm3, %v2293_v41, %v1139_v57  ;;  %v1145_v60 = vmul.f32 %v2295_v48, %v1133_v53  ;;  %vm1151_vm4 = vweird.f32 %v2295_v48 }
 0x2d8   : > { %v1154_v61 = vmul.f32 %v1143_v58, %v3044_v13  ;;  %vm1152_vm6 = vmor %vm1150_vm5, %vm1151_vm4 }
 0x2d9   : > { %v1146_v62 = vmul.f32 %v2295_v48, %v1145_v60 }
 0x2da   : > { %1156 = vst [vmem:[#allocation3] sm:$0xff] %v1154_v61 }
 0x2db   : > { %1158 = vst [vmem:[#allocation15] sm:$0xff] %v1154_v61  ;;  %v1147_v50 = vmul.f32 0.5, %v1146_v62 }
 0x2dd   : > { %v1148_v63 = vsub.f32 1.5, %v1147_v50 }
 0x2df   : > { %v1149_v4 = vmul.f32 %v2295_v48, %v1148_v63 }
 0x2e1   : > { %v1153_v5 = vsel %vm1152_vm6, %v2295_v48, %v1149_v4 }
 0x2e2   : > { %v1155_v13 = vmul.f32 %v1153_v5, %v3085_v19 }
 0x2e4   : > { %1157 = vst [vmem:[#allocation3 + $0x8] sm:$0xff] %v1155_v13 }
 0x2e5   : > { %1159 = vst [vmem:[#allocation15 + $0x8] sm:$0xff] %v1155_v13 }
 0x2e6   : > { %2121 = dma.vmem_to_hbm [thread:$0]  (%p3346_p5), %s1613_s21, 256, %s1615_s26, [#allocation16], %s2627_s11, %s2627_s11, %s2628_s27  }
 0x2e7   : > { %2589 = dma.done.wait (%p3347_p13), [#allocation16], 256   ;;  %p3348_p0 = pmov %p3346_p5 }
 0x2e9   : > { %2591 = vsyncadd (%p3348_p0), [#allocation16], 4294967040 }
 0x2ea PF: > { %p2157_p3 = scmp.ge.s32.totalorder %s2610_s16, 2  ;;  %s1634_s20 = sand.u32 1, %s2598_s13  }
 0x2eb   : > { %s1635_s4 = scalar_lea.sflag [#allocation7], %s1634_s20 }
 0x2ec   : > { %p2143_p7 = pnand %p2157_p3, %p2719_p6 }
 0x2ee   : > { %p2144_p2 = pneg %p2143_p7 }
 0x2f0   : > { %2593 = dma.done.wait (%p2144_p2), %s1635_s4, 512  }
 0x2f1   : > { %2595 = vsyncadd (%p2144_p2), %s1635_s4, 4294966784  ;;  %p27_p1 = scmp.ge.s32.totalorder %s2761_s18, 6   ;;  %s3350_s13 = smov %s2602_s14 }
 0x2f2   : > { %s3351_s14 = smov %s2606_s15  ;;  %s3352_s15 = smov %s2770_s3 }
 0x2f3   : > { %s3353_s16 = smov %s2761_s18  ;;  %29 = sbr.rel (!%p27_p1) target bundleno = 12 (0xc), region = 131 }
 0x2f8   :  { %1641 = vsyncpa [#allocation6], 1 }
 0x2f9   :  { %1643 = vsyncpa [#allocation6 + $0x1], 1 }
 0x2fa   :  { %1644 = vsyncpa [#allocation9], 1 }
 0x2fb   :  { %1645 = vsyncpa [#allocation12], 1 }
 0x2fc   :  { %1646 = vsyncpa [#allocation7], 1 }
 0x2fd   :  { %1648 = vsyncpa [#allocation7 + $0x1], 1 }
 0x2fe   :  { %1649 = vsyncpa [#allocation16], 1 }
 0x2ff   :  { %1650 = vsyncmov [#allocation4] }
 0x302   :  { %s1651_s16 = vpop.sfrf %1650 }
 0x303   :  { %p2017_p6 = scmp.ne.s32.totalorder %s1651_s16, 0 }
 0x305   :  { %1655 = shalt.err (%p2017_p6)  }
 0x306   :  { %1657 = vsyncmov [#allocation4 + $0x1] }
 0x309   :  { %s1658_s17 = vpop.sfrf %1657 }
 0x30a   :  { %p2018_p4 = scmp.ne.s32.totalorder %s1658_s17, 0 }
 0x30c   :  { %1662 = shalt.err (%p2018_p4)  }

</bundles_post_ra>
